<compile_context>
chip_gen: v6e
topology: v6e:2x2x1
jax: 0.10.0
libtpu: 0.0.40
codegen_flags: <defaults>
</compile_context>

<pallas_src>
import math

import jax
import jax.numpy as jnp
from jax.experimental import pallas as pl
from jax.experimental.pallas import tpu as pltpu


def _pos_enc_kernel(y_ref, x_ref, inv_dim_t_ref, phase_ref, out_ref):
    """Per-batch-element: out[0, 0:P, :]  = sin(y_embed * inv_dim_t + phase)   (pos_y half)
                          out[0, P:2P, :] = sin(x_embed * inv_dim_t + phase)   (pos_x half)."""
    P = inv_dim_t_ref.shape[0]

    y_embed = y_ref[0]               # (1, HW)  float32, already cumsummed / normalized
    x_embed = x_ref[0]               # (1, HW)
    inv_dim_t = inv_dim_t_ref[...]   # (P, 1)   precomputed 1/dim_t
    phase = phase_ref[...]           # (P, 1)   0 on even channels, pi/2 on odd (cos(t)=sin(t+pi/2))

    # (P,1)*(1,HW) is a cheap lane+sublane broadcast; two direct slab stores, no concatenate.
    out_ref[0, 0:P, :] = jnp.sin(inv_dim_t * y_embed + phase)       # pos_y half
    out_ref[0, P:2 * P, :] = jnp.sin(inv_dim_t * x_embed + phase)   # pos_x half


def positional_encoding_2d(mask, *, num_pos_feats=64, temperature=10000,
                           normalize=False, scale=None):
    """mask: (B, H, W) bool (True = padded). Returns (B, 2*num_pos_feats, H, W) float32."""
    if scale is not None and normalize is False:
        raise ValueError("normalize should be True if scale is passed")
    if scale is None:
        scale = 2 * math.pi

    B, H, W = mask.shape
    P = num_pos_feats
    HW = H * W
    HW_pad = pl.cdiv(HW, 128) * 128   # keep output stores full-width / unmasked

    # ---- tiny prep in the wrapper (per review: O(B*H*W) work, no quadratic operators) ----
    not_mask = (~mask).astype(jnp.float32)
    y_embed = jnp.cumsum(not_mask, axis=1)
    x_embed = jnp.cumsum(not_mask, axis=2)
    if normalize:
        eps = 1e-6
        y_embed = (y_embed - 0.5) / (y_embed[:, -1:, :] + eps) * scale
        x_embed = (x_embed - 0.5) / (x_embed[:, :, -1:] + eps) * scale

    y_flat = y_embed.reshape(B, 1, HW)
    x_flat = x_embed.reshape(B, 1, HW)
    if HW_pad != HW:
        pad = ((0, 0), (0, 0), (0, HW_pad - HW))
        y_flat = jnp.pad(y_flat, pad)
        x_flat = jnp.pad(x_flat, pad)

    # ---- grid-invariant constants (DMA'd once; block index never changes) ----
    i = jnp.arange(P, dtype=jnp.float32)
    dim_t = temperature ** (2.0 * jnp.floor(i / 2.0) / P)
    inv_dim_t = (1.0 / dim_t).astype(jnp.float32).reshape(P, 1)
    phase = jnp.where(jnp.arange(P) % 2 == 1,
                      jnp.float32(math.pi / 2.0), jnp.float32(0.0)).reshape(P, 1)

    out_flat = pl.pallas_call(
        _pos_enc_kernel,
        out_shape=jax.ShapeDtypeStruct((B, 2 * P, HW_pad), jnp.float32),
        grid_spec=pltpu.PrefetchScalarGridSpec(
            num_scalar_prefetch=0,
            grid=(B,),
            in_specs=[
                pl.BlockSpec((1, 1, HW_pad), lambda b: (b, 0, 0)),   # y_embed (per-batch)
                pl.BlockSpec((1, 1, HW_pad), lambda b: (b, 0, 0)),   # x_embed (per-batch)
                pl.BlockSpec((P, 1), lambda b: (0, 0)),              # 1/dim_t (invariant)
                pl.BlockSpec((P, 1), lambda b: (0, 0)),              # phase   (invariant)
            ],
            out_specs=pl.BlockSpec((1, 2 * P, HW_pad), lambda b: (b, 0, 0)),
        ),
        compiler_params=pltpu.CompilerParams(dimension_semantics=("parallel",)),
    )(y_flat, x_flat, inv_dim_t, phase)

    # (B, 2P, HW_pad) -> drop padding -> contiguous split of the minor dim (no transpose pass).
    return out_flat[:, :, :HW].reshape(B, 2 * P, H, W)


def _reference(mask, *, num_pos_feats, temperature, normalize, scale):
    """Pure-JAX transliteration of the PyTorch forward, for verification."""
    if scale is None:
        scale = 2 * math.pi
    not_mask = (~mask).astype(jnp.float32)
    y_embed = jnp.cumsum(not_mask, axis=1)
    x_embed = jnp.cumsum(not_mask, axis=2)
    if normalize:
        eps = 1e-6
        y_embed = (y_embed - 0.5) / (y_embed[:, -1:, :] + eps) * scale
        x_embed = (x_embed - 0.5) / (x_embed[:, :, -1:] + eps) * scale
    i = jnp.arange(num_pos_feats, dtype=jnp.float32)
    dim_t = temperature ** (2.0 * jnp.floor(i / 2.0) / num_pos_feats)
    pos_x = x_embed[:, :, :, None] / dim_t
    pos_y = y_embed[:, :, :, None] / dim_t
    B, H, W = mask.shape
    pos_x = jnp.stack((jnp.sin(pos_x[..., 0::2]), jnp.cos(pos_x[..., 1::2])), axis=4
                      ).reshape(B, H, W, -1)
    pos_y = jnp.stack((jnp.sin(pos_y[..., 0::2]), jnp.cos(pos_y[..., 1::2])), axis=4
                      ).reshape(B, H, W, -1)
    pos = jnp.concatenate((pos_y, pos_x), axis=3)
    return jnp.transpose(pos, (0, 3, 1, 2))


if __name__ == "__main__":
    key = jax.random.PRNGKey(0)
    B, C_in, H, W = 2, 4, 16, 16
    P = 32  # num_pos_feats -> output channels = 2 * P = 64

    kx, km = jax.random.split(key)
    # image part of the NestedTensor; the PyTorch module only uses it for device placement.
    x = jax.random.normal(kx, (B, C_in, H, W), dtype=jnp.float32)
    mask = jax.random.bernoulli(km, p=0.3, shape=(B, H, W))        # True = padded

    ok = True
    for normalize in (False, True):
        out = positional_encoding_2d(mask, num_pos_feats=P, temperature=10000,
                                     normalize=normalize, scale=None)
        out = jax.block_until_ready(out)
        ref = _reference(mask, num_pos_feats=P, temperature=10000,
                         normalize=normalize, scale=None)
        assert out.shape == (B, 2 * P, H, W)
        assert out.dtype == jnp.float32
        if not jnp.allclose(out, ref, atol=1e-4, rtol=1e-4):
            ok = False

    print("KERNEL_OK" if ok else "MISMATCH")
</pallas_src>

<mosaic_0001>
module attributes {stable_mosaic.version = 11 : i64} {
  func.func @_pos_enc_kernel(%arg0: i32, %arg1: memref<1x1x256xf32, #tpu.memory_space<vmem>>, %arg2: memref<1x1x256xf32, #tpu.memory_space<vmem>>, %arg3: memref<32x1xf32, #tpu.memory_space<vmem>>, %arg4: memref<32x1xf32, #tpu.memory_space<vmem>>, %arg5: memref<1x64x256xf32, #tpu.memory_space<vmem>>) attributes {dimension_semantics = [#tpu.dimension_semantics<parallel>], iteration_bounds = array<i64: 2>, scalar_prefetch = 0 : i64, scratch_operands = 0 : i64, tpu.core_type = #tpu.core_type<tc>, window_params = [{transform_indices = @transform_0, window_bounds = array<i64: 1, 1, 256>}, {transform_indices = @transform_1, window_bounds = array<i64: 1, 1, 256>}, {pipeline_mode = #tpu.pipeline_mode<synchronous>, transform_indices = @transform_2, window_bounds = array<i64: 32, 1>}, {pipeline_mode = #tpu.pipeline_mode<synchronous>, transform_indices = @transform_3, window_bounds = array<i64: 32, 1>}, {transform_indices = @transform_4, window_bounds = array<i64: 1, 64, 256>}]} {
    %c0 = arith.constant 0 : index
    %c0_0 = arith.constant 0 : index
    %c0_1 = arith.constant 0 : index
    %0 = vector.load %arg1[%c0, %c0_0, %c0_1] : memref<1x1x256xf32, #tpu.memory_space<vmem>>, vector<1x1x256xf32>
    %1 = vector.shape_cast %0 : vector<1x1x256xf32> to vector<1x256xf32>
    %c0_2 = arith.constant 0 : index
    %c0_3 = arith.constant 0 : index
    %c0_4 = arith.constant 0 : index
    %2 = vector.load %arg2[%c0_2, %c0_3, %c0_4] : memref<1x1x256xf32, #tpu.memory_space<vmem>>, vector<1x1x256xf32>
    %3 = vector.shape_cast %2 : vector<1x1x256xf32> to vector<1x256xf32>
    %c0_5 = arith.constant 0 : index
    %c0_6 = arith.constant 0 : index
    %4 = vector.load %arg3[%c0_5, %c0_6] : memref<32x1xf32, #tpu.memory_space<vmem>>, vector<32x1xf32>
    %c0_7 = arith.constant 0 : index
    %c0_8 = arith.constant 0 : index
    %5 = vector.load %arg4[%c0_7, %c0_8] : memref<32x1xf32, #tpu.memory_space<vmem>>, vector<32x1xf32>
    %6 = vector.broadcast %4 : vector<32x1xf32> to vector<32x256xf32>
    %7 = vector.broadcast %1 : vector<1x256xf32> to vector<32x256xf32>
    %8 = arith.mulf %6, %7 : vector<32x256xf32>
    %9 = vector.broadcast %5 : vector<32x1xf32> to vector<32x256xf32>
    %10 = arith.addf %8, %9 : vector<32x256xf32>
    %11 = math.sin %10 : vector<32x256xf32>
    %c0_9 = arith.constant 0 : index
    %c0_10 = arith.constant 0 : index
    %c0_11 = arith.constant 0 : index
    %12 = vector.load %arg5[%c0_9, %c0_10, %c0_11] : memref<1x64x256xf32, #tpu.memory_space<vmem>>, vector<1x32x256xf32>
    %13 = vector.shape_cast %12 : vector<1x32x256xf32> to vector<32x256xf32>
    %14 = vector.shape_cast %11 : vector<32x256xf32> to vector<1x32x256xf32>
    tpu.vector_store %arg5[%c0_9, %c0_10, %c0_11], %14 {strides = array<i32>} : memref<1x64x256xf32, #tpu.memory_space<vmem>>, vector<1x32x256xf32>,
    %15 = vector.broadcast %4 : vector<32x1xf32> to vector<32x256xf32>
    %16 = vector.broadcast %3 : vector<1x256xf32> to vector<32x256xf32>
    %17 = arith.mulf %15, %16 : vector<32x256xf32>
    %18 = vector.broadcast %5 : vector<32x1xf32> to vector<32x256xf32>
    %19 = arith.addf %17, %18 : vector<32x256xf32>
    %20 = math.sin %19 : vector<32x256xf32>
    %c0_12 = arith.constant 0 : index
    %c32 = arith.constant 32 : index
    %c0_13 = arith.constant 0 : index
    %21 = vector.load %arg5[%c0_12, %c32, %c0_13] : memref<1x64x256xf32, #tpu.memory_space<vmem>>, vector<1x32x256xf32>
    %22 = vector.shape_cast %21 : vector<1x32x256xf32> to vector<32x256xf32>
    %23 = vector.shape_cast %20 : vector<32x256xf32> to vector<1x32x256xf32>
    tpu.vector_store %arg5[%c0_12, %c32, %c0_13], %23 {strides = array<i32>} : memref<1x64x256xf32, #tpu.memory_space<vmem>>, vector<1x32x256xf32>,
    return
  }
  func.func @transform_0(%arg0: i32) -> (i32, i32, i32) {
    %c0_i32 = arith.constant 0 : i32
    %c0_i32_0 = arith.constant 0 : i32
    %c0_i32_1 = arith.constant 0 : i32
    return %arg0, %c0_i32, %c0_i32_0 : i32, i32, i32
  }
  func.func @transform_1(%arg0: i32) -> (i32, i32, i32) {
    %c0_i32 = arith.constant 0 : i32
    %c0_i32_0 = arith.constant 0 : i32
    %c0_i32_1 = arith.constant 0 : i32
    return %arg0, %c0_i32, %c0_i32_0 : i32, i32, i32
  }
  func.func @transform_2(%arg0: i32) -> (i32, i32) {
    %c0_i32 = arith.constant 0 : i32
    %c0_i32_0 = arith.constant 0 : i32
    %c0_i32_1 = arith.constant 0 : i32
    return %c0_i32, %c0_i32_0 : i32, i32
  }
  func.func @transform_3(%arg0: i32) -> (i32, i32) {
    %c0_i32 = arith.constant 0 : i32
    %c0_i32_0 = arith.constant 0 : i32
    %c0_i32_1 = arith.constant 0 : i32
    return %c0_i32, %c0_i32_0 : i32, i32
  }
  func.func @transform_4(%arg0: i32) -> (i32, i32, i32) {
    %c0_i32 = arith.constant 0 : i32
    %c0_i32_0 = arith.constant 0 : i32
    %c0_i32_1 = arith.constant 0 : i32
    return %arg0, %c0_i32, %c0_i32_0 : i32, i32, i32
  }
}

</mosaic_0001>

<bundles_post_ra>
// kernel: tpu_custom_call.1
= control target key start
LH: loop header
LB: loop body
LE: loop exit
PB: predicated region body
PF: predicated region fallthrough
CT: control target
= control target key end

     0   :  { %9 = vsyncpa [#allocation3], 0  ;;  %s3883_s0 = inlined_call_operand.vmem [shape: f32[2,1,256], index: 0, kind: input, shape index: {}]   ;;  %s3884_s1 = inlined_call_operand.vmem [shape: f32[2,1,256], index: 1, kind: input, shape index: {}]   ;;  %s3885_s2 = inlined_call_operand.vmem [shape: f32[32,1], index: 2, kind: input, shape index: {}]   ;;  %s3886_s3 = inlined_call_operand.vmem [shape: f32[32,1], index: 3, kind: input, shape index: {}]   ;;  %s3887_s4 = inlined_call_operand.hbm [shape: f32[2,64,256], index: 4, kind: output, shape index: {}]  }
   0x1   :  { %11 = vsyncpa [#allocation3 + $0x1], 0  ;;  %s2434_s15 = smov 0   ;;  %s2436_s16 = smov 0  }
   0x2   :  { %s2438_s17 = smov 0   ;;  %s2440_s18 = smov 0  }
   0x3 LB: > { %s2455_s19 = sadd.s32 4294967295, %s2397_s18   ;;  %s2082_s20 = sadd.s32 4294967294, %s2397_s18   ;;  %s2397_s18 = sphi %s2440_s18, %s3921_s18   ;;  %s2393_s17 = sphi %s2438_s17, %s3920_s17   ;;  %s2389_s16 = sphi %s2436_s16, %s3919_s16   ;;  %s2385_s15 = sphi %s2434_s15, %s3918_s15  }
   0x4   : > { %s2459_s21 = sadd.s32 1, %s2397_s18   ;;  %s118_s22 = sadd.s32 1, %s2393_s17 }
   0x5   : > { %s115_s23 = ssub.s32 %s2397_s18, %s2459_s21  ;;  %p128_p0 = scmp.ne.s32.totalorder %s2393_s17, %s2389_s16 }
   0x6   : > { %p116_p1 = scmp.eq.s32.totalorder %s115_s23, 0  ;;  %p129_p2 = scmp.eq.s32.totalorder %s2455_s19, 1 }
   0x7   : > { %p134_p3 = scmp.ne.s32.totalorder %s2389_s16, %s2385_s15  ;;  %p135_p4 = scmp.eq.s32.totalorder %s2082_s20, 1 }
   0x8   : > { %s2470_s24 = scalar_select %p116_p1, %s2393_s17, %s118_s22  }
   0x9   : > { %p2472_p5 = por %p129_p2, %p128_p0  ;;  %p2476_p6 = por %p135_p4, %p134_p3 }
   0xa   : > { %p2085_p7 = scmp.ge.s32.totalorder %s2397_s18, 1  ;;  %p173_p8 = scmp.lt.s32.totalorder %s2397_s18, 3 }
   0xc   : > { %p174_p9 = pnand %p2085_p7, %p173_p8 }
   0xd   : > { %p202_p10 = scmp.lt.s32.totalorder (!%p174_p9), %s2455_s19, 1  ;;  %s199_s5 = sand.u32 (!%p174_p9), 1, %s2389_s16  }
   0xe   : > { %177 = sbr.rel (%p174_p9) target bundleno = 607 (0x25f), region = 36  ;;  %s2824_s6 = sshll.u32 (!%p174_p9), %s199_s5, 7 }
   0xf   : > { %s2853_s7 = scalar_lea.vmem (!%p174_p9), [#allocation2], %s2824_s6  ;;  %s2158_s11 = sshll.u32 (!%p174_p9), %s2455_s19, 11 }
  0x10   : > { %s2008_s12 = sshll.u32 (!%p174_p9), %s2853_s7, 4  ;;  %s3835_s20 = scalar_lea.hbm (!%p174_p9), %s3887_s4, %s2158_s11  ;;  %s3837_s12 = int_to_ptr.vmem [resolvable:$true] %s2008_s12 }
  0x11   : > { %s2337_s22 = scalar_lea.vmem (!%p174_p9), %s3837_s12, 2048 }
  0x12   : > { %p2338_p11 = scmp.ne.s32.totalorder (!%p174_p9), %s3837_s12, %s2337_s22 }
  0x13   : > { %v214_v0 = vld [vmem:[%s3885_s2 + $0x10] sm:$0xff]  ;;  %v212_v1 = vld [vmem:[%s3885_s2] sm:$0xff]  ;;  %v2399_v2 = vmov 0   ;;  %v215_v3 = vld [vmem:[%s3885_s2 + $0x18] sm:$0xff]  ;;  %s2508_s23 = scalar_select %p202_p10, %s2455_s19, 1  ;;  %v241_v9 = vlaneseq }
  0x14   : > { %2272 = vset.pattern.permute.xlu1 %v2399_v2  ;;  %2271 = vset.pattern.permute.xlu0 %v2399_v2  ;;  %v213_v4 = vld [vmem:[%s3885_s2 + $0x8] sm:$0xff]  ;;  %v216_v6 = vld [vmem:[%s3886_s3] sm:$0xff]  ;;  %v219_v7 = vld [vmem:[%s3886_s3 + $0x18] sm:$0xff]  ;;  %v2400_v57 = vmov 683565275   ;;  %s3843_s19 = scalar_lea.sflag [#allocation3], %s199_s5  ;;  %p2339_p12 = pnand %p2338_p11, %p2472_p5 }
  0x15   : > { %232 = vperm.xlu1 %2272, %v214_v0   ;;  %222 = vperm.xlu0 %2271, %v212_v1   ;;  %v217_v5 = vld [vmem:[%s3886_s3 + $0x8] sm:$0xff]  ;;  %v218_v8 = vld [vmem:[%s3886_s3 + $0x10] sm:$0xff]  ;;  %s2087_s27 = sshll.u32 %s2508_s23, 1  ;;  %v2511_v10 = vshrl.u32 %v241_v9, 7  ;;  %v2401_v61 = vmov 2475754826  }
  0x16   : > { %s205_s30 = scalar_lea.vmem %s3883_s0, %s2087_s27  ;;  %v2402_v63 = vmov 2131351028   ;;  %v2403_v1 = vmov 2102212464   ;;  %s209_s10 = scalar_lea.vmem %s3884_s1, %s2087_s27 }
  0x17   : > { %v243_v11 = vsub.s32 0, %v2511_v10  ;;  %v247_v12 = vsub.s32 1, %v2511_v10  ;;  %v210_v15 = vld [vmem:[%s205_s30] sm:$0x3]  ;;  %p2340_p13 = pneg %p2339_p12  ;;  %s2406_s23 = smov [#allocation2]  }
  0x18   : > { %s2341_s27 = sshll.u32 %s2406_s23, 4  ;;  %s2342_s27 = int_to_ptr.vmem [resolvable:$false] %s2341_s27 }
  0x19   : > { %237 = vperm.xlu1 %2272, %v215_v3   ;;  %227 = vperm.xlu0 %2271, %v213_v4   ;;  %v2526_v16 = vrot.slane %v210_v15, %v243_v11  ;;  %v2530_v17 = vrot.slane %v210_v15, %v247_v12  ;;  %v2404_v3 = vmov 920167782   ;;  %v2405_v15 = vmov 1326507024   ;;  %s2343_s28 = scalar_lea.vmem %s2342_s27, 4096  ;;  %p2344_p0 = scmp.lt.s32.totalorder %s3837_s12, %s2342_s27 }
  0x1a   : > { %p2345_p1 = scmp.lt.s32.totalorder %s2343_s28, %s2337_s22 }
  0x1c   : > { %p2346_p2 = por %p2345_p1, %p2344_p0 }
  0x1d   : > { %266 = vperm.xlu1 %2272, %v217_v5   ;;  %261 = vperm.xlu0 %2271, %v216_v6  }
  0x1e   : > { %p2347_p3 = pnand %p2346_p2, %p2340_p13 }
  0x21   : > { %276 = vperm.xlu1 %2272, %v219_v7   ;;  %271 = vperm.xlu0 %2271, %v218_v8  }
  0x90   : > { %v2520_v13 = vpop.permute.xlu1 %232  ;;  %v2522_v14 = vpop.permute.xlu0 %222 }
  0x91   : > { %v251_v20 = vmul.f32 %v2526_v16, %v2522_v14  ;;  %v252_v21 = vmul.f32 %v2530_v17, %v2522_v14 }
  0x94   : > { %v2532_v18 = vpop.permute.xlu1 %237  ;;  %v2534_v19 = vpop.permute.xlu0 %227 }
  0x95   : > { %v253_v26 = vmul.f32 %v2526_v16, %v2534_v19  ;;  %v254_v45 = vmul.f32 %v2530_v17, %v2534_v19 }
  0x98   : > { %v2540_v22 = vpop.permute.xlu0 %261  ;;  %v2548_v25 = vpop.permute.xlu1 %266 }
  0x99   : > { %v2543_v23 = vadd.f32 %v2540_v22, %v251_v20  ;;  %v2546_v24 = vadd.f32 %v2540_v22, %v252_v21  ;;  %v2557_v31 = vadd.f32 %v2548_v25, %v253_v26  ;;  %v2568_v49 = vadd.f32 %v2548_v25, %v254_v45 }
  0x9b   : > { %v287_v27 = vand.u32 2147483647, %v2543_v23  ;;  %v290_v28 = vand.u32 2139095040, %v2543_v23  ;;  %v391_v29 = vand.u32 2147483647, %v2546_v24  ;;  %v394_v30 = vand.u32 2139095040, %v2546_v24 }
  0x9c   : > { %v498_v38 = vand.u32 2139095040, %v2557_v31  ;;  %v495_v43 = vand.u32 2147483647, %v2557_v31  ;;  %vm289_vm13 = vcmp.lt.s32.totalorder %v2543_v23, 0  ;;  %vm393_vm14 = vcmp.lt.s32.totalorder %v2546_v24, 0 }
  0x9d   : > { %v291_v32 = vshrl.u32 %v290_v28, 23  ;;  %v395_v33 = vshrl.u32 %v394_v30, 23  ;;  %v294_v34 = vand.u32 8388607, %v287_v27  ;;  %v398_v35 = vand.u32 8388607, %v391_v29 }
  0x9e   : > { %v499_v44 = vshrl.u32 %v498_v38, 23  ;;  %v2578_v55 = vand.u32 8388607, %v495_v43  ;;  %vm2687_vm15 = vcmp.le.f32.partialorder %v287_v27, 0.7853982 }
  0x9f   : > { %v2089_v36 = vadd.s32 4294967169, %v291_v32  ;;  %v2093_v37 = vadd.s32 4294967169, %v395_v33  ;;  %v295_v41 = vor.u32 8388608, %v294_v34  ;;  %v399_v42 = vor.u32 8388608, %v398_v35 }
  0xa0   : > { %v2097_v48 = vadd.s32 4294967169, %v499_v44 }
  0xa1   : > { %v297_v39 = vadd.s32 1, %v2089_v36  ;;  %v401_v40 = vadd.s32 1, %v2093_v37  ;;  %v2570_v52 = vshll.u32 %v295_v41, 8  ;;  %v2574_v54 = vshll.u32 %v399_v42, 8 }
  0xa2   : > { %v2581_v60 = vadd.s32 1, %v2097_v48 }
  0xa3   : > { %vm298_vm0 = vcmp.gt.s32.totalorder %v297_v39, 0  ;;  %vm402_vm1 = vcmp.gt.s32.totalorder %v401_v40, 0 }
  0xa4   : > { %v299_v46 = vsel %vm298_vm0, %v297_v39, 0  ;;  %v403_v47 = vsel %vm402_vm1, %v401_v40, 0  ;;  %vm506_vm11 = vcmp.gt.s32.totalorder %v2581_v60, 0  ;;  %vm2695_vm0 = vcmp.le.f32.partialorder %v391_v29, 0.7853982 }
  0xa5   : > { %v300_v50 = vshrl.u32 %v299_v46, 5  ;;  %v301_v51 = vand.u32 31, %v299_v46  ;;  %v2572_v53 = vshrl.u32 %v403_v47, 5  ;;  %v405_v59 = vand.u32 31, %v403_v47 }
  0xa7   : > { %v302_v56 = vsub.s32 32, %v301_v51  ;;  %v304_v58 = vshll.u32 %v2400_v57, %v301_v51  ;;  %v307_v62 = vshll.u32 %v2401_v61, %v301_v51  ;;  %v310_v0 = vshll.u32 %v2402_v63, %v301_v51 }
  0xa8   : > { %v313_v2 = vshll.u32 %v2403_v1, %v301_v51  ;;  %v316_v4 = vshll.u32 %v2404_v3, %v301_v51  ;;  %vm319_vm2 = vcmp.lt.s32.totalorder %v300_v50, 1  ;;  %vm320_vm3 = vcmp.lt.s32.totalorder %v300_v50, 2 }
  0xa9   : > { %v305_v5 = vshrl.u32 %v2401_v61, %v302_v56  ;;  %v308_v6 = vshrl.u32 %v2402_v63, %v302_v56  ;;  %v311_v7 = vshrl.u32 %v2403_v1, %v302_v56  ;;  %v303_v8 = vshrl.u32 %v2400_v57, %v302_v56 }
  0xaa   : > { %v314_v9 = vshrl.u32 %v2404_v3, %v302_v56  ;;  %v317_v20 = vshrl.u32 %v2405_v15, %v302_v56  ;;  %v406_v30 = vsub.s32 32, %v405_v59  ;;  %vm321_vm4 = vcmp.lt.s32.totalorder %v300_v50, 3 }
  0xab   : > { %v306_v21 = vor.u32 %v305_v5, %v304_v58  ;;  %v309_v26 = vor.u32 %v308_v6, %v307_v62  ;;  %v312_v28 = vor.u32 %v311_v7, %v310_v0  ;;  %vm322_vm5 = vcmp.lt.s32.totalorder %v300_v50, 4 }
  0xac   : > { %v315_v32 = vor.u32 %v314_v9, %v313_v2  ;;  %v318_v33 = vor.u32 %v317_v20, %v316_v4  ;;  %v408_v41 = vshll.u32 %v2400_v57, %v405_v59  ;;  %v409_v45 = vshrl.u32 %v2401_v61, %v406_v30 }
  0xad   : > { %v323_v34 = vsel %vm319_vm2, %v303_v8, %v306_v21  ;;  %v324_v35 = vsel %vm322_vm5, %v312_v28, 2102212464  ;;  %v327_v36 = vsel %vm319_vm2, %v306_v21, %v309_v26  ;;  %v331_v37 = vsel %vm319_vm2, %v309_v26, %v312_v28 }
  0xae   : > { %v325_v38 = vsel %vm321_vm4, %v309_v26, %v324_v35  ;;  %v328_v39 = vsel %vm322_vm5, %v315_v32, 920167782  ;;  %v332_v40 = vsel %vm322_vm5, %v318_v33, 1326507024  ;;  %v411_v46 = vshll.u32 %v2401_v61, %v405_v59 }
  0xaf   : > { %v329_v42 = vsel %vm321_vm4, %v312_v28, %v328_v39  ;;  %v333_v44 = vsel %vm321_vm4, %v315_v32, %v332_v40  ;;  %v326_v47 = vsel %vm320_vm3, %v323_v34, %v325_v38  ;;  %v412_v56 = vshrl.u32 %v2402_v63, %v406_v30 }
  0xb0   : > { %v330_v48 = vsel %vm320_vm3, %v327_v36, %v329_v42  ;;  %v334_v51 = vsel %vm320_vm3, %v331_v37, %v333_v44  ;;  %v410_v4 = vor.u32 %v409_v45, %v408_v41  ;;  %v414_v6 = vshll.u32 %v2402_v63, %v405_v59 }
  0xb1   : > { %v2604_v58 = vmul.u32.u64.low %v2570_v52, %v334_v51  ;;  %v2605_v62 = vmul.u32.u64.high %v2570_v52, %v334_v51, %v2604_v58  ;;  %v2608_v0 = vmul.u32.u64.low %v2570_v52, %v330_v48  ;;  %v2609_v2 = vmul.u32.u64.high %v2570_v52, %v330_v48, %v2608_v0 }
  0xb2   : > { %v413_v5 = vor.u32 %v412_v56, %v411_v46  ;;  %v415_v7 = vshrl.u32 %v2403_v1, %v406_v30  ;;  %v407_v50 = vshrl.u32 %v2400_v57, %v406_v30  ;;  %v417_v8 = vshll.u32 %v2403_v1, %v405_v59 }
  0xb3   : > { %v418_v9 = vshrl.u32 %v2404_v3, %v406_v30  ;;  %v421_v20 = vshrl.u32 %v2405_v15, %v406_v30  ;;  %v342_v21 = vmul.u32 %v2570_v52, %v326_v47  ;;  %v420_v28 = vshll.u32 %v2404_v3, %v405_v59 }
  0xb4   : > { %v416_v26 = vor.u32 %v415_v7, %v414_v6  ;;  %vm423_vm6 = vcmp.lt.s32.totalorder %v2572_v53, 1  ;;  %vm344_vm7 = vc.u32 %v2605_v62, %v2608_v0  ;;  %v345_v32 = vadd.s32 1, %v2609_v2 }
  0xb5   : > { %v419_v33 = vor.u32 %v418_v9, %v417_v8  ;;  %vm424_vm8 = vcmp.lt.s32.totalorder %v2572_v53, 2  ;;  %v422_v34 = vor.u32 %v421_v20, %v420_v28  ;;  %vm425_vm9 = vcmp.lt.s32.totalorder %v2572_v53, 3 }
  0xb6   : > { %vm426_vm10 = vcmp.lt.s32.totalorder %v2572_v53, 4  ;;  %v431_v30 = vsel %vm423_vm6, %v410_v4, %v413_v5  ;;  %v346_v52 = vsel %vm344_vm7, %v345_v32, %v2609_v2  ;;  %v435_v36 = vsel %vm423_vm6, %v413_v5, %v416_v26 }
  0xb7   : > { %v428_v35 = vsel %vm426_vm10, %v416_v26, 2102212464  ;;  %v432_v59 = vsel %vm426_vm10, %v419_v33, 920167782  ;;  %v347_v37 = vadd.s32 %v346_v52, %v342_v21  ;;  %v427_v38 = vsel %vm423_vm6, %v407_v50, %v410_v4  ;;  %v2647_v50 = vpop.permute.xlu0 %271 }
  0xb8   : > { %v433_v39 = vsel %vm425_vm9, %v416_v26, %v432_v59  ;;  %v436_v40 = vsel %vm426_vm10, %v422_v34, 1326507024  ;;  %v429_v41 = vsel %vm425_vm9, %v413_v5, %v428_v35  ;;  %v507_v58 = vsel %vm506_vm11, %v2581_v60, 0 }
  0xb9   : > { %v434_v42 = vsel %vm424_vm8, %v431_v30, %v433_v39  ;;  %v437_v44 = vsel %vm425_vm9, %v419_v33, %v436_v40  ;;  %v348_v45 = vadd.s32 536870912, %v347_v37  ;;  %v430_v4 = vsel %vm424_vm8, %v427_v38, %v429_v41 }
  0xba   : > { %v438_v46 = vsel %vm424_vm8, %v435_v36, %v437_v44  ;;  %v2634_v47 = vmul.u32.u64.low %v2574_v54, %v434_v42  ;;  %v2635_v48 = vmul.u32.u64.high %v2574_v54, %v434_v42, %v2634_v47  ;;  %v509_v5 = vand.u32 31, %v507_v58 }
  0xbb   : > { %v2639_v51 = vmul.u32.u64.low %v2574_v54, %v438_v46  ;;  %v2640_v56 = vmul.u32.u64.high %v2574_v54, %v438_v46, %v2639_v51  ;;  %v349_v2 = vshrl.u32 %v348_v45, 30  ;;  %v503_v6 = vor.u32 8388608, %v2578_v55 }
  0xbc   : > { %v602_v7 = vand.u32 2139095040, %v2568_v49  ;;  %v449_v9 = vadd.s32 1, %v2635_v48  ;;  %v510_v20 = vsub.s32 32, %v509_v5  ;;  %v599_v21 = vand.u32 2147483647, %v2568_v49 }
  0xbd   : > { %v350_v8 = vshll.u32 %v349_v2, 30  ;;  %v255_v60 = vmul.f32 %v2526_v16, %v2520_v13  ;;  %v446_v26 = vmul.u32 %v2574_v54, %v430_v4  ;;  %vm448_vm12 = vc.u32 %v2640_v56, %v2634_v47 }
  0xbe   : > { %v2658_v53 = vmul.f32 %v2530_v17, %v2520_v13  ;;  %v450_v28 = vsel %vm448_vm12, %v449_v9, %v2635_v48  ;;  %v2667_v34 = vshll.u32 %v503_v6, 8  ;;  %v603_v54 = vshrl.u32 %v602_v7, 23 }
  0xbf   : > { %v2661_v55 = vsub.s32 %v347_v37, %v350_v8  ;;  %v2665_v32 = vadd.f32 %v2647_v50, %v255_v60  ;;  %v451_v33 = vadd.s32 %v450_v28, %v446_v26  ;;  %v343_v30 = vadd.s32 %v2608_v0, %v2605_v62 }
  0xc0   : > { %v513_v35 = vshrl.u32 %v2401_v61, %v510_v20  ;;  %v2676_v59 = vand.u32 8388607, %v599_v21  ;;  %v373_v36 = vsub.s32 4, %v349_v2  ;;  %v508_v38 = vshrl.u32 %v507_v58, 5 }
  0xc1   : > { %v353_v52 = vsub.s32 0, %v2661_v55  ;;  %v452_v37 = vadd.s32 536870912, %v451_v33  ;;  %v516_v39 = vshrl.u32 %v2402_v63, %v510_v20  ;;  %v512_v41 = vshll.u32 %v2400_v57, %v509_v5 }
  0xc2   : > { %v519_v62 = vshrl.u32 %v2403_v1, %v510_v20  ;;  %v522_v0 = vshrl.u32 %v2404_v3, %v510_v20  ;;  %v515_v44 = vshll.u32 %v2401_v61, %v509_v5  ;;  %v525_v45 = vshrl.u32 %v2405_v15, %v510_v20 }
  0xc3   : > { %v2090_v40 = vmin.u32 %v353_v52, %v2661_v55  ;;  %v453_v42 = vshrl.u32 %v452_v37, 30  ;;  %v2101_v46 = vadd.s32 4294967169, %v603_v54  ;;  %v514_v58 = vor.u32 %v513_v35, %v512_v41 }
  0xc4   : > { %v518_v4 = vshll.u32 %v2402_v63, %v509_v5  ;;  %v521_v6 = vshll.u32 %v2403_v1, %v509_v5  ;;  %v517_v60 = vor.u32 %v516_v39, %v515_v44  ;;  %v524_v27 = vshll.u32 %v2404_v3, %v509_v5 }
  0xc5   : > { %v355_v51 = vclz %v2090_v40  ;;  %v454_v8 = vshll.u32 %v453_v42, 30  ;;  %v477_v9 = vsub.s32 4, %v453_v42  ;;  %v374_v28 = vsel %vm289_vm13, %v373_v36, %v349_v2 }
  0xc6   : > { %v520_v54 = vor.u32 %v519_v62, %v518_v4  ;;  %v523_v52 = vor.u32 %v522_v0, %v521_v6  ;;  %v511_v37 = vshrl.u32 %v2400_v57, %v510_v20  ;;  %v526_v40 = vor.u32 %v525_v45, %v524_v27 }
  0xc7   : > { %v2091_v26 = vadd.s32 4294967294, %v355_v51  ;;  %v2702_v35 = vsub.s32 %v451_v33, %v454_v8  ;;  %vm527_vm1 = vcmp.lt.s32.totalorder %v508_v38, 1  ;;  %vm528_vm3 = vcmp.lt.s32.totalorder %v508_v38, 2 }
  0xc8   : > { %vm529_vm4 = vcmp.lt.s32.totalorder %v508_v38, 3  ;;  %vm530_vm5 = vcmp.lt.s32.totalorder %v508_v38, 4  ;;  %v478_v5 = vsel %vm393_vm14, %v477_v9, %v453_v42  ;;  %v535_v2 = vsel %vm527_vm1, %v514_v58, %v517_v60 }
  0xc9   : > { %vm2092_vm2 = vcmp.lt.s32.totalorder %v2091_v26, 0  ;;  %v457_v39 = vsub.s32 0, %v2702_v35  ;;  %v532_v33 = vsel %vm530_vm5, %v520_v54, 2102212464  ;;  %v536_v20 = vsel %vm530_vm5, %v523_v52, 920167782 }
  0xca   : > { %v358_v29 = vsel %vm2092_vm2, 0, %v2091_v26  ;;  %v537_v44 = vsel %vm529_vm4, %v520_v54, %v536_v20  ;;  %v539_v45 = vsel %vm527_vm1, %v517_v60, %v520_v54  ;;  %v540_v6 = vsel %vm530_vm5, %v526_v40, 1326507024 }
  0xcb   : > { %v359_v36 = vsub.s32 32, %v358_v29  ;;  %v363_v41 = vsub.s32 4294967266, %v358_v29  ;;  %v360_v62 = vshll.u32 %v2661_v55, %v358_v29  ;;  %v2094_v0 = vmin.u32 %v457_v39, %v2702_v35 }
  0xcc   : > { %v538_v42 = vsel %vm528_vm3, %v535_v2, %v537_v44  ;;  %v376_v8 = vsel %vm2687_vm15, 0, %v374_v28  ;;  %v531_v27 = vsel %vm527_vm1, %v511_v37, %v514_v58  ;;  %v533_v55 = vsel %vm529_vm4, %v517_v60, %v532_v33 }
  0xcd   : > { %v361_v51 = vshrl.u32 %v343_v30, %v359_v36  ;;  %v364_v4 = vadd.s32 127, %v363_v41  ;;  %v459_v9 = vclz %v2094_v0  ;;  %v480_v39 = vsel %vm2695_vm0, 0, %v478_v5 }
  0xce   : > { %v541_v30 = vsel %vm529_vm4, %v523_v52, %v540_v6  ;;  %v2726_v40 = vmul.u32.u64.low %v2667_v34, %v538_v42  ;;  %v2727_v36 = vmul.u32.u64.high %v2667_v34, %v538_v42, %v2726_v40  ;;  %v534_v58 = vsel %vm528_vm3, %v531_v27, %v533_v55 }
  0xcf   : > { %v362_v26 = vor.u32 %v361_v51, %v360_v62  ;;  %v365_v29 = vshll.u32 %v364_v4, 23  ;;  %v2095_v54 = vadd.s32 4294967294, %v459_v9  ;;  %v542_v2 = vsel %vm528_vm3, %v539_v45, %v541_v30 }
  0xd0   : > { %v2732_v60 = vmul.u32.u64.low %v2667_v34, %v542_v2  ;;  %v2733_v37 = vmul.u32.u64.high %v2667_v34, %v542_v2, %v2732_v60  ;;  %v380_v41 = vadd.s32 3, %v376_v8  ;;  %v447_v5 = vadd.s32 %v2634_v47, %v2640_v56 }
  0xd1   : > { %v366_v28 = vor.u32 4788187, %v365_v29  ;;  %vm2096_vm6 = vcmp.lt.s32.totalorder %v2095_v54, 0  ;;  %v609_v52 = vadd.s32 1, %v2101_v46  ;;  %v369_v20 = vcvt.s32.f32 %v362_v26 }
  0xd2   : > { %v462_v62 = vsel %vm2096_vm6, 0, %v2095_v54  ;;  %v484_v0 = vadd.s32 3, %v480_v39  ;;  %v550_v51 = vmul.u32 %v2667_v34, %v534_v58  ;;  %v553_v38 = vadd.s32 1, %v2727_v36 }
  0xd3   : > { %v367_v33 = vand.u32 2147483647, %v366_v28  ;;  %v463_v44 = vsub.s32 32, %v462_v62  ;;  %v467_v45 = vsub.s32 4294967266, %v462_v62  ;;  %v464_v42 = vshll.u32 %v2702_v35, %v462_v62 }
  0xd4   : > { %vm552_vm7 = vc.u32 %v2733_v37, %v2726_v40  ;;  %vm610_vm8 = vcmp.gt.s32.totalorder %v609_v52, 0  ;;  %v706_v55 = vand.u32 2139095040, %v2665_v32  ;;  %v2746_v34 = vmul.f32 %v2526_v16, %v2532_v18 }
  0xd5   : > { %v370_v4 = vmul.f32 %v369_v20, %v367_v33  ;;  %v465_v47 = vshrl.u32 %v447_v5, %v463_v44  ;;  %v468_v56 = vadd.s32 127, %v467_v45  ;;  %v554_v46 = vsel %vm552_vm7, %v553_v38, %v2727_v36 }
  0xd6   : > { %v611_v6 = vsel %vm610_vm8, %v609_v52, 0  ;;  %v555_v9 = vadd.s32 %v554_v46, %v550_v51  ;;  %v607_v29 = vor.u32 8388608, %v2676_v59  ;;  %v703_v2 = vand.u32 2147483647, %v2665_v32 }
  0xd7   : > { %v371_v8 = vxor.u32 2147483648, %v370_v4  ;;  %v613_v27 = vand.u32 31, %v611_v6  ;;  %v466_v26 = vor.u32 %v465_v47, %v464_v42  ;;  %v469_v35 = vshll.u32 %v468_v56, 23 }
  0xd8   : > { %v556_v30 = vadd.s32 536870912, %v555_v9  ;;  %v2755_v28 = vand.u32 3, %v380_v41  ;;  %v2757_v16 = vand.u32 3, %v484_v0  ;;  %v707_v5 = vshrl.u32 %v706_v55, 23 }
  0xd9   : > { %v372_v39 = vsel %vm289_vm13, %v371_v8, %v370_v4  ;;  %v614_v54 = vsub.s32 32, %v613_v27  ;;  %v470_v58 = vor.u32 4788187, %v469_v35  ;;  %v473_v33 = vcvt.s32.f32 %v466_v26 }
  0xda   : > { %v375_v36 = vsel %vm2687_vm15, %v2543_v23, %v372_v39  ;;  %v2759_v60 = vshrl.u32 %v556_v30, 30  ;;  %v2764_v48 = vshrl.u32 %v611_v6, 5  ;;  %v616_v41 = vshll.u32 %v2400_v57, %v613_v27 }
  0xdb   : > { %2273 = vcosq.f32 %v375_v36  ;;  %v617_v59 = vshrl.u32 %v2401_v61, %v614_v54  ;;  %v471_v52 = vand.u32 2147483647, %v470_v58  ;;  %v620_v20 = vshrl.u32 %v2402_v63, %v614_v54 }
  0xdc   : > { %2275 = vsinq.f32 %v375_v36  ;;  %v558_v62 = vshll.u32 %v2759_v60, 30  ;;  %v623_v0 = vshrl.u32 %v2403_v1, %v614_v54  ;;  %v619_v45 = vshll.u32 %v2401_v61, %v613_v27 }
  0xdd   : > { %v474_v44 = vmul.f32 %v473_v33, %v471_v52  ;;  %v625_v51 = vshll.u32 %v2403_v1, %v613_v27  ;;  %v626_v38 = vshrl.u32 %v2404_v3, %v614_v54  ;;  %v618_v42 = vor.u32 %v617_v59, %v616_v41 }
  0xde   : > { %v2771_v4 = vsub.s32 %v555_v9, %v558_v62  ;;  %v622_v47 = vshll.u32 %v2402_v63, %v613_v27  ;;  %v2774_v56 = vshll.u32 %v607_v29, 8  ;;  %v621_v6 = vor.u32 %v620_v20, %v619_v45 }
  0xdf   : > { %v475_v46 = vxor.u32 2147483648, %v474_v44  ;;  %v627_v8 = vor.u32 %v626_v38, %v625_v51  ;;  %v629_v55 = vshrl.u32 %v2405_v15, %v614_v54  ;;  %v628_v39 = vshll.u32 %v2404_v3, %v613_v27 }
  0xe0   : > { %v561_v26 = vsub.s32 0, %v2771_v4  ;;  %v624_v35 = vor.u32 %v623_v0, %v622_v47  ;;  %v2781_v30 = vand.u32 8388607, %v703_v2  ;;  %vm386_vm9 = vcmp.eq.s32.totalorder %v2755_v28, 2 }
  0xe1   : > { %v476_v9 = vsel %vm393_vm14, %v475_v46, %v474_v44  ;;  %v551_v29 = vadd.s32 %v2726_v40, %v2733_v37  ;;  %vm631_vm10 = vcmp.lt.s32.totalorder %v2764_v48, 1  ;;  %v2105_v36 = vadd.s32 4294967169, %v707_v5 }
  0xe2   : > { %vm383_vm11 = vcmp.eq.s32.totalorder %v2755_v28, 0  ;;  %v479_v27 = vsel %vm2695_vm0, %v2546_v24, %v476_v9  ;;  %v2098_v58 = vmin.u32 %v561_v26, %v2771_v4  ;;  %v630_v59 = vor.u32 %v629_v55, %v628_v39 }
  0xe3   : > { %vm634_vm12 = vcmp.lt.s32.totalorder %v2764_v48, 4  ;;  %vm382_vm13 = vcmp.lt.s32.totalorder %v2755_v28, 2  ;;  %2277 = vcosq.f32 %v479_v27  ;;  %v615_v40 = vshrl.u32 %v2400_v57, %v614_v54 }
  0xe4   : > { %v639_v37 = vsel %vm631_vm10, %v618_v42, %v621_v6  ;;  %v640_v5 = vsel %vm634_vm12, %v627_v8, 920167782  ;;  %vm379_vm14 = vweird.f32 %v2543_v23  ;;  %2279 = vsinq.f32 %v479_v27 }
  0xe5   : > { %vm497_vm15 = vcmp.lt.s32.totalorder %v2557_v31, 0  ;;  %v563_v7 = vclz %v2098_v58  ;;  %vm633_vm0 = vcmp.lt.s32.totalorder %v2764_v48, 3  ;;  %v636_v52 = vsel %vm634_vm12, %v624_v35, 2102212464 }
  0xe6   : > { %v581_v54 = vsub.s32 4, %v2759_v60  ;;  %vm632_vm1 = vcmp.lt.s32.totalorder %v2764_v48, 2  ;;  %v641_v33 = vsel %vm633_vm0, %v624_v35, %v640_v5  ;;  %v643_v20 = vsel %vm631_vm10, %v621_v6, %v624_v35 }
  0xe7   : > { %v2099_v62 = vadd.s32 4294967294, %v563_v7  ;;  %v635_v41 = vsel %vm631_vm10, %v615_v40, %v618_v42  ;;  %v642_v0 = vsel %vm632_vm1, %v639_v37, %v641_v33  ;;  %v644_v44 = vsel %vm634_vm12, %v630_v59, 1326507024 }
  0xe8   : > { %v2274_v45 = vpop.eup %2273  ;;  %v637_v51 = vsel %vm633_vm0, %v621_v6, %v636_v52  ;;  %v645_v38 = vsel %vm633_vm0, %v627_v8, %v644_v44  ;;  %v2818_v47 = vmul.u32.u64.low %v2774_v56, %v642_v0  ;;  %v2819_v46 = vmul.u32.u64.high %v2774_v56, %v642_v0, %v2818_v47 }
  0xe9   : > { %v2276_v55 = vpop.eup %2275  ;;  %v387_v26 = vxor.u32 2147483648, %v2274_v45  ;;  %vm2100_vm2 = vcmp.lt.s32.totalorder %v2099_v62, 0  ;;  %v646_v42 = vsel %vm632_vm1, %v643_v20, %v645_v38  ;;  %v713_v35 = vadd.s32 1, %v2105_v36 }
  0xea   : > { %v384_v39 = vxor.u32 2147483648, %v2276_v55  ;;  %v566_v9 = vsel %vm2100_vm2, 0, %v2099_v62  ;;  %v2829_v6 = vmul.u32.u64.low %v2774_v56, %v646_v42  ;;  %v2830_v8 = vmul.u32.u64.high %v2774_v56, %v646_v42, %v2829_v6 }
  0xeb   : > { %v388_v27 = vsel %vm386_vm9, %v387_v26, %v2276_v55  ;;  %v567_v58 = vsub.s32 32, %v566_v9  ;;  %v571_v59 = vsub.s32 4294967266, %v566_v9  ;;  %v638_v40 = vsel %vm632_vm1, %v635_v41, %v637_v51 }
  0xec   : > { %v385_v37 = vsel %vm383_vm11, %v2274_v45, %v384_v39  ;;  %v568_v5 = vshll.u32 %v2771_v4, %v566_v9  ;;  %v657_v36 = vadd.s32 1, %v2819_v46  ;;  %vm714_vm3 = vcmp.gt.s32.totalorder %v713_v35, 0 }
  0xed   : > { %v389_v7 = vsel %vm382_vm13, %v385_v37, %v388_v27  ;;  %v569_v52 = vshrl.u32 %v551_v29, %v567_v58  ;;  %v572_v33 = vadd.s32 127, %v571_v59  ;;  %v715_v20 = vsel %vm714_vm3, %v713_v35, 0 }
  0xee   : > { %v390_v62 = vsel %vm379_vm14, nan, %v389_v7  ;;  %vm483_vm4 = vweird.f32 %v2546_v24  ;;  %v582_v48 = vsel %vm497_vm15, %v581_v54, %v2759_v60  ;;  %v654_v4 = vmul.u32 %v2774_v56, %v638_v40 }
  0xef   : > { %vm656_vm5 = vc.u32 %v2830_v8, %v2818_v47  ;;  %v570_v41 = vor.u32 %v569_v52, %v568_v5  ;;  %v573_v28 = vshll.u32 %v572_v33, 23  ;;  %v717_v0 = vand.u32 31, %v715_v20  ;;  %1119 = vst [vmem:[%s2853_s7] sm:$0xff] %v390_v62 }
  0xf0   : > { %v658_v29 = vsel %vm656_vm5, %v657_v36, %v2819_v46  ;;  %v2858_v23 = vadd.f32 %v2647_v50, %v2658_v53  ;;  %vm486_vm6 = vcmp.lt.s32.totalorder %v2757_v16, 2  ;;  %vm2863_vm7 = vcmp.le.f32.partialorder %v495_v43, 0.7853982  ;;  %v2278_v54 = vpop.eup %2277 }
  0xf1   : > { %v659_v56 = vadd.s32 %v658_v29, %v654_v4  ;;  %vm487_vm8 = vcmp.eq.s32.totalorder %v2757_v16, 0  ;;  %vm490_vm9 = vcmp.eq.s32.totalorder %v2757_v16, 2  ;;  %v574_v44 = vor.u32 4788187, %v573_v28  ;;  %v2280_v51 = vpop.eup %2279 }
  0xf2   : > { %v718_v45 = vsub.s32 32, %v717_v0  ;;  %v491_v38 = vxor.u32 2147483648, %v2278_v54  ;;  %v584_v53 = vsel %vm2863_vm7, 0, %v582_v48  ;;  %v711_v55 = vor.u32 8388608, %v2781_v30 }
  0xf3   : > { %v660_v46 = vadd.s32 536870912, %v659_v56  ;;  %v488_v43 = vxor.u32 2147483648, %v2280_v51  ;;  %v575_v26 = vand.u32 2147483647, %v574_v44  ;;  %v577_v42 = vcvt.s32.f32 %v570_v41 }
  0xf4   : > { %v716_v35 = vshrl.u32 %v715_v20, 5  ;;  %v492_v39 = vsel %vm490_vm9, %v491_v38, %v2280_v51  ;;  %v720_v6 = vshll.u32 %v2400_v57, %v717_v0  ;;  %v727_v27 = vshrl.u32 %v2403_v1, %v718_v45 }
  0xf5   : > { %v661_v9 = vshrl.u32 %v660_v46, 30  ;;  %v489_v58 = vsel %vm487_vm8, %v2278_v54, %v488_v43  ;;  %v578_v59 = vmul.f32 %v577_v42, %v575_v26  ;;  %v721_v40 = vshrl.u32 %v2401_v61, %v718_v45 }
  0xf6   : > { %v724_v37 = vshrl.u32 %v2402_v63, %v718_v45  ;;  %v493_v30 = vsel %vm486_vm6, %v489_v58, %v492_v39  ;;  %v723_v36 = vshll.u32 %v2401_v61, %v717_v0  ;;  %v726_v7 = vshll.u32 %v2402_v63, %v717_v0  ;;  %v2900_v58 = vpop.permute.xlu1 %276 }
  0xf7   : > { %v662_v5 = vshll.u32 %v661_v9, 30  ;;  %v494_v52 = vsel %vm483_vm4, nan, %v493_v30  ;;  %v579_v33 = vxor.u32 2147483648, %v578_v59  ;;  %vm601_vm10 = vcmp.lt.s32.totalorder %v2568_v49, 0 }
  0xf8   : > { %v729_v20 = vshll.u32 %v2403_v1, %v717_v0  ;;  %v730_v62 = vshrl.u32 %v2404_v3, %v718_v45  ;;  %v728_v4 = vor.u32 %v727_v27, %v726_v7  ;;  %v732_v16 = vshll.u32 %v2404_v3, %v717_v0  ;;  %1120 = vst [vmem:[%s2853_s7 + $0x8] sm:$0xff] %v494_v52 }
  0xf9   : > { %v2887_v48 = vsub.s32 %v659_v56, %v662_v5  ;;  %v733_v41 = vshrl.u32 %v2405_v15, %v718_v45  ;;  %v580_v28 = vsel %vm497_vm15, %v579_v33, %v578_v59  ;;  %v722_v24 = vor.u32 %v721_v40, %v720_v6 }
  0xfa   : > { %v725_v29 = vor.u32 %v724_v37, %v723_v36  ;;  %v731_v54 = vor.u32 %v730_v62, %v729_v20  ;;  %v583_v44 = vsel %vm2863_vm7, %v2557_v31, %v580_v28  ;;  %v588_v51 = vadd.s32 3, %v584_v53 }
  0xfb   : > { %v665_v56 = vsub.s32 0, %v2887_v48  ;;  %v734_v38 = vor.u32 %v733_v41, %v732_v16  ;;  %2281 = vcosq.f32 %v583_v44  ;;  %v719_v0 = vshrl.u32 %v2400_v57, %v718_v45 }
  0xfc   : > { %vm735_vm11 = vcmp.lt.s32.totalorder %v716_v35, 1  ;;  %vm738_vm12 = vcmp.lt.s32.totalorder %v716_v35, 4  ;;  %2283 = vsinq.f32 %v583_v44  ;;  %v685_v43 = vsub.s32 4, %v661_v9 }
  0xfd   : > { %v2102_v46 = vmin.u32 %v665_v56, %v2887_v48  ;;  %v740_v26 = vsel %vm738_vm12, %v728_v4, 2102212464  ;;  %v743_v42 = vsel %vm735_vm11, %v722_v24, %v725_v29  ;;  %v744_v39 = vsel %vm738_vm12, %v731_v54, 920167782 }
  0xfe   : > { %v747_v6 = vsel %vm735_vm11, %v725_v29, %v728_v4  ;;  %v748_v27 = vsel %vm738_vm12, %v734_v38, 1326507024  ;;  %vm736_vm13 = vcmp.lt.s32.totalorder %v716_v35, 2  ;;  %vm737_vm14 = vcmp.lt.s32.totalorder %v716_v35, 3 }
  0xff   : > { %v667_v60 = vclz %v2102_v46  ;;  %v751_v53 = vshll.u32 %v711_v55, 8  ;;  %v739_v59 = vsel %vm735_vm11, %v719_v0, %v722_v24  ;;  %v741_v40 = vsel %vm737_vm14, %v725_v29, %v740_v26 }
 0x100   : > { %v745_v45 = vsel %vm737_vm14, %v728_v4, %v744_v39  ;;  %v749_v37 = vsel %vm737_vm14, %v731_v54, %v748_v27  ;;  %v686_v5 = vsel %vm601_vm10, %v685_v43, %v661_v9  ;;  %v2915_v55 = vadd.f32 %v2900_v58, %v2746_v34 }
 0x101   : > { %v2103_v30 = vadd.s32 4294967294, %v667_v60  ;;  %v746_v36 = vsel %vm736_vm13, %v743_v42, %v745_v45  ;;  %v750_v7 = vsel %vm736_vm13, %v747_v6, %v749_v37  ;;  %v742_v4 = vsel %vm736_vm13, %v739_v59, %v741_v40 }
 0x102   : > { %v2906_v52 = vmul.u32.u64.low %v751_v53, %v750_v7  ;;  %v2907_v33 = vmul.u32.u64.high %v751_v53, %v750_v7, %v2906_v52  ;;  %v2909_v20 = vmul.u32.u64.low %v751_v53, %v746_v36  ;;  %v2910_v62 = vmul.u32.u64.high %v751_v53, %v746_v36, %v2909_v20 }
 0x103   : > { %vm2104_vm15 = vcmp.lt.s32.totalorder %v2103_v30, 0  ;;  %v810_v9 = vand.u32 2139095040, %v2858_v23  ;;  %v589_v16 = vand.u32 3, %v588_v51  ;;  %vm2921_vm0 = vcmp.le.f32.partialorder %v599_v21, 0.7853982 }
 0x104   : > { %v655_v28 = vadd.s32 %v2818_v47, %v2830_v8  ;;  %v670_v24 = vsel %vm2104_vm15, 0, %v2103_v30  ;;  %v688_v34 = vsel %vm2921_vm0, 0, %v686_v5  ;;  %v758_v44 = vmul.u32 %v751_v53, %v742_v4 }
 0x105   : > { %v671_v29 = vsub.s32 32, %v670_v24  ;;  %v675_v54 = vsub.s32 4294967266, %v670_v24  ;;  %v811_v35 = vshrl.u32 %v810_v9, 23  ;;  %vm760_vm1 = vc.u32 %v2907_v33, %v2909_v20 }
 0x106   : > { %v761_v51 = vadd.s32 1, %v2910_v62  ;;  %v807_v21 = vand.u32 2147483647, %v2858_v23  ;;  %v672_v56 = vshll.u32 %v2887_v48, %v670_v24  ;;  %vm590_vm2 = vcmp.lt.s32.totalorder %v589_v16, 2 }
 0x107   : > { %v673_v38 = vshrl.u32 %v655_v28, %v671_v29  ;;  %v676_v0 = vadd.s32 127, %v675_v54  ;;  %v2109_v47 = vadd.s32 4294967169, %v811_v35  ;;  %v914_v46 = vand.u32 2139095040, %v2915_v55 }
 0x108   : > { %v762_v8 = vsel %vm760_vm1, %v761_v51, %v2910_v62  ;;  %v2282_v43 = vpop.eup %2281  ;;  %vm591_vm3 = vcmp.eq.s32.totalorder %v589_v16, 0  ;;  %vm594_vm4 = vcmp.eq.s32.totalorder %v589_v16, 2  ;;  %v692_v53 = vadd.s32 3, %v688_v34 }
 0x109   : > { %v674_v26 = vor.u32 %v673_v38, %v672_v56  ;;  %v677_v42 = vshll.u32 %v676_v0, 23  ;;  %v763_v39 = vadd.s32 %v762_v8, %v758_v44  ;;  %v817_v6 = vadd.s32 1, %v2109_v47  ;;  %v2284_v27 = vpop.eup %2283 }
 0x10a   : > { %v595_v60 = vxor.u32 2147483648, %v2282_v43  ;;  %v592_v59 = vxor.u32 2147483648, %v2284_v27  ;;  %v814_v45 = vand.u32 8388607, %v807_v21  ;;  %v915_v5 = vshrl.u32 %v914_v46, 23 }
 0x10b   : > { %v678_v48 = vor.u32 4788187, %v677_v42  ;;  %v764_v40 = vadd.s32 536870912, %v763_v39  ;;  %v681_v30 = vcvt.s32.f32 %v674_v26  ;;  %vm818_vm5 = vcmp.gt.s32.totalorder %v817_v6, 0 }
 0x10c   : > { %v596_v37 = vsel %vm594_vm4, %v595_v60, %v2284_v27  ;;  %v593_v36 = vsel %vm591_vm3, %v2282_v43, %v592_v59  ;;  %v819_v62 = vsel %vm818_vm5, %v817_v6, 0  ;;  %v258_v4 = vmul.f32 %v2530_v17, %v2532_v18 }
 0x10d   : > { %v679_v7 = vand.u32 2147483647, %v678_v48  ;;  %v2938_v52 = vshrl.u32 %v764_v40, 30  ;;  %vm587_vm6 = vweird.f32 %v2557_v31  ;;  %v597_v9 = vsel %vm590_vm2, %v593_v36, %v596_v37 }
 0x10e   : > { %v821_v28 = vand.u32 31, %v819_v62  ;;  %v598_v24 = vsel %vm587_vm6, nan, %v597_v9  ;;  %v2946_v34 = vadd.f32 %v2900_v58, %v258_v4  ;;  %v2948_v35 = vand.u32 3, %v692_v53 }
 0x10f   : > { %v682_v29 = vmul.f32 %v681_v30, %v679_v7  ;;  %v766_v54 = vshll.u32 %v2938_v52, 30  ;;  %v815_v44 = vor.u32 8388608, %v814_v45  ;;  %1121 = vst [vmem:[%s2853_s7 + $0x10] sm:$0xff] %v598_v24  ;;  %v820_v17 = vshrl.u32 %v819_v62, 5 }
 0x110   : > { %v822_v51 = vsub.s32 32, %v821_v28  ;;  %v2113_v31 = vadd.s32 4294967169, %v915_v5  ;;  %v824_v16 = vshll.u32 %v2400_v57, %v821_v28  ;;  %v827_v47 = vshll.u32 %v2401_v61, %v821_v28 }
 0x111   : > { %v683_v56 = vxor.u32 2147483648, %v682_v29  ;;  %v2951_v38 = vsub.s32 %v763_v39, %v766_v54  ;;  %v830_v26 = vshll.u32 %v2402_v63, %v821_v28  ;;  %v833_v27 = vshll.u32 %v2403_v1, %v821_v28 }
 0x112   : > { %v825_v0 = vshrl.u32 %v2401_v61, %v822_v51  ;;  %v828_v8 = vshrl.u32 %v2402_v63, %v822_v51  ;;  %v831_v42 = vshrl.u32 %v2403_v1, %v822_v51  ;;  %v834_v60 = vshrl.u32 %v2404_v3, %v822_v51 }
 0x113   : > { %v684_v46 = vsel %vm601_vm10, %v683_v56, %v682_v29  ;;  %v769_v43 = vsub.s32 0, %v2951_v38  ;;  %v836_v45 = vshll.u32 %v2404_v3, %v821_v28  ;;  %v837_v37 = vshrl.u32 %v2405_v15, %v822_v51 }
 0x114   : > { %v687_v39 = vsel %vm2921_vm0, %v2568_v49, %v684_v46  ;;  %v826_v6 = vor.u32 %v825_v0, %v824_v16  ;;  %v829_v59 = vor.u32 %v828_v8, %v827_v47  ;;  %v832_v48 = vor.u32 %v831_v42, %v830_v26 }
 0x115   : > { %2285 = vcosq.f32 %v687_v39  ;;  %v2106_v53 = vmin.u32 %v769_v43, %v2951_v38  ;;  %v835_v40 = vor.u32 %v834_v60, %v833_v27  ;;  %v759_v41 = vadd.s32 %v2909_v20, %v2907_v33 }
 0x116   : > { %2287 = vsinq.f32 %v687_v39  ;;  %v2972_v5 = vshll.u32 %v815_v44, 8  ;;  %v911_v36 = vand.u32 2147483647, %v2915_v55  ;;  %vm705_vm7 = vcmp.lt.s32.totalorder %v2665_v32, 0 }
 0x117   : > { %v771_v30 = vclz %v2106_v53  ;;  %v823_v7 = vshrl.u32 %v2400_v57, %v822_v51  ;;  %v838_v62 = vor.u32 %v837_v37, %v836_v45  ;;  %vm839_vm8 = vcmp.lt.s32.totalorder %v820_v17, 1 }
 0x118   : > { %v921_v4 = vadd.s32 1, %v2113_v31  ;;  %vm841_vm9 = vcmp.lt.s32.totalorder %v820_v17, 3  ;;  %vm842_vm10 = vcmp.lt.s32.totalorder %v820_v17, 4  ;;  %v847_v28 = vsel %vm839_vm8, %v826_v6, %v829_v59 }
 0x119   : > { %v2107_v9 = vadd.s32 4294967294, %v771_v30  ;;  %v844_v24 = vsel %vm842_vm10, %v832_v48, 2102212464  ;;  %v848_v29 = vsel %vm842_vm10, %v835_v40, 920167782  ;;  %v851_v33 = vsel %vm839_vm8, %v829_v59, %v832_v48 }
 0x11a   : > { %v852_v20 = vsel %vm842_vm10, %v838_v62, 1326507024  ;;  %vm2981_vm11 = vcmp.le.f32.partialorder %v703_v2, 0.7853982  ;;  %vm840_vm13 = vcmp.lt.s32.totalorder %v820_v17, 2  ;;  %v849_v44 = vsel %vm841_vm9, %v832_v48, %v848_v29 }
 0x11b   : > { %vm2108_vm12 = vcmp.lt.s32.totalorder %v2107_v9, 0  ;;  %v853_v51 = vsel %vm841_vm9, %v835_v40, %v852_v20  ;;  %v789_v31 = vsub.s32 4, %v2938_v52  ;;  %v850_v16 = vsel %vm840_vm13, %v847_v28, %v849_v44 }
 0x11c   : > { %v774_v56 = vsel %vm2108_vm12, 0, %v2107_v9  ;;  %v854_v0 = vsel %vm840_vm13, %v851_v33, %v853_v51  ;;  %v843_v2 = vsel %vm839_vm8, %v823_v7, %v826_v6  ;;  %v845_v46 = vsel %vm841_vm9, %v829_v59, %v844_v24 }
 0x11d   : > { %v775_v47 = vsub.s32 32, %v774_v56  ;;  %v779_v8 = vsub.s32 4294967266, %v774_v56  ;;  %v2993_v43 = vmul.u32.u64.low %v2972_v5, %v854_v0  ;;  %v2994_v26 = vmul.u32.u64.high %v2972_v5, %v854_v0, %v2993_v43 }
 0x11e   : > { %v2997_v42 = vmul.u32.u64.low %v2972_v5, %v850_v16  ;;  %v2998_v39 = vmul.u32.u64.high %v2972_v5, %v850_v16, %v2997_v42  ;;  %vm691_vm14 = vweird.f32 %v2568_v49  ;;  %v776_v27 = vshll.u32 %v2951_v38, %v774_v56 }
 0x11f   : > { %v777_v60 = vshrl.u32 %v759_v41, %v775_v47  ;;  %v780_v53 = vadd.s32 127, %v779_v8  ;;  %vm922_vm15 = vcmp.gt.s32.totalorder %v921_v4, 0  ;;  %vm694_vm0 = vcmp.lt.s32.totalorder %v2948_v35, 2 }
 0x120   : > { %v846_v6 = vsel %vm840_vm13, %v843_v2, %v845_v46  ;;  %v918_v59 = vand.u32 8388607, %v911_v36  ;;  %v923_v48 = vsel %vm922_vm15, %v921_v4, 0  ;;  %v790_v37 = vsel %vm705_vm7, %v789_v31, %v2938_v52 }
 0x121   : > { %v778_v40 = vor.u32 %v777_v60, %v776_v27  ;;  %v781_v45 = vshll.u32 %v780_v53, 23  ;;  %v925_v30 = vand.u32 31, %v923_v48  ;;  %vm695_vm1 = vcmp.eq.s32.totalorder %v2948_v35, 0 }
 0x122   : > { %v2286_v7 = vpop.eup %2285  ;;  %vm698_vm2 = vcmp.eq.s32.totalorder %v2948_v35, 2  ;;  %vm864_vm3 = vc.u32 %v2994_v26, %v2997_v42  ;;  %v865_v38 = vadd.s32 1, %v2998_v39  ;;  %v862_v4 = vmul.u32 %v2972_v5, %v846_v6 }
 0x123   : > { %v2288_v17 = vpop.eup %2287  ;;  %v699_v41 = vxor.u32 2147483648, %v2286_v7  ;;  %v782_v62 = vor.u32 4788187, %v781_v45  ;;  %v926_v9 = vsub.s32 32, %v925_v30  ;;  %v792_v52 = vsel %vm2981_vm11, 0, %v790_v37 }
 0x124   : > { %v696_v28 = vxor.u32 2147483648, %v2288_v17  ;;  %v866_v24 = vsel %vm864_vm3, %v865_v38, %v2998_v39  ;;  %v919_v29 = vor.u32 8388608, %v918_v59  ;;  %v785_v44 = vcvt.s32.f32 %v778_v40 }
 0x125   : > { %v700_v33 = vsel %vm698_vm2, %v699_v41, %v2288_v17  ;;  %v783_v20 = vand.u32 2147483647, %v782_v62  ;;  %v867_v51 = vadd.s32 %v866_v24, %v862_v4  ;;  %v924_v31 = vshrl.u32 %v923_v48, 5 }
 0x126   : > { %v697_v56 = vsel %vm695_vm1, %v2286_v7, %v696_v28  ;;  %v929_v16 = vshrl.u32 %v2401_v61, %v926_v9  ;;  %v932_v5 = vshrl.u32 %v2402_v63, %v926_v9  ;;  %v935_v2 = vshrl.u32 %v2403_v1, %v926_v9 }
 0x127   : > { %v701_v0 = vsel %vm694_vm0, %v697_v56, %v700_v33  ;;  %v786_v47 = vmul.f32 %v785_v44, %v783_v20  ;;  %v868_v8 = vadd.s32 536870912, %v867_v51  ;;  %v928_v43 = vshll.u32 %v2400_v57, %v925_v30 }
 0x128   : > { %v702_v46 = vsel %vm691_vm14, nan, %v701_v0  ;;  %v931_v39 = vshll.u32 %v2401_v61, %v925_v30  ;;  %v934_v27 = vshll.u32 %v2402_v63, %v925_v30  ;;  %v937_v6 = vshll.u32 %v2403_v1, %v925_v30 }
 0x129   : > { %v787_v60 = vxor.u32 2147483648, %v786_v47  ;;  %v3031_v53 = vshrl.u32 %v868_v8, 30  ;;  %v938_v35 = vshrl.u32 %v2404_v3, %v926_v9  ;;  %1122 = vst [vmem:[%s2853_s7 + $0x18] sm:$0xff] %v702_v46  ;;  %v930_v59 = vor.u32 %v929_v16, %v928_v43 }
 0x12a   : > { %v933_v48 = vor.u32 %v932_v5, %v931_v39  ;;  %v940_v40 = vshll.u32 %v2404_v3, %v925_v30  ;;  %v941_v49 = vshrl.u32 %v2405_v15, %v926_v9  ;;  %v936_v7 = vor.u32 %v935_v2, %v934_v27 }
 0x12b   : > { %v788_v45 = vsel %vm705_vm7, %v787_v60, %v786_v47  ;;  %v870_v37 = vshll.u32 %v3031_v53, 30  ;;  %v939_v38 = vor.u32 %v938_v35, %v937_v6  ;;  %v796_v41 = vadd.s32 3, %v792_v52 }
 0x12c   : > { %v791_v17 = vsel %vm2981_vm11, %v2665_v32, %v788_v45  ;;  %v942_v62 = vor.u32 %v941_v49, %v940_v40  ;;  %v959_v4 = vshll.u32 %v919_v29, 8  ;;  %vm943_vm4 = vcmp.lt.s32.totalorder %v924_v31, 1 }
 0x12d   : > { %2289 = vcosq.f32 %v791_v17  ;;  %v3044_v28 = vsub.s32 %v867_v51, %v870_v37  ;;  %v1018_v30 = vand.u32 2139095040, %v2946_v34  ;;  %v927_v24 = vshrl.u32 %v2400_v57, %v926_v9 }
 0x12e   : > { %2291 = vsinq.f32 %v791_v17  ;;  %vm946_vm5 = vcmp.lt.s32.totalorder %v924_v31, 4  ;;  %v951_v33 = vsel %vm943_vm4, %v930_v59, %v933_v48  ;;  %vm945_vm6 = vcmp.lt.s32.totalorder %v924_v31, 3 }
 0x12f   : > { %v873_v20 = vsub.s32 0, %v3044_v28  ;;  %v948_v44 = vsel %vm946_vm5, %v936_v7, 2102212464  ;;  %v952_v54 = vsel %vm946_vm5, %v939_v38, 920167782  ;;  %vm944_vm7 = vcmp.lt.s32.totalorder %v924_v31, 2 }
 0x130   : > { %v953_v52 = vsel %vm945_vm6, %v936_v7, %v952_v54  ;;  %v955_v56 = vsel %vm943_vm4, %v933_v48, %v936_v7  ;;  %v956_v29 = vsel %vm946_vm5, %v942_v62, 1326507024  ;;  %v947_v16 = vsel %vm943_vm4, %v927_v24, %v930_v59 }
 0x131   : > { %v2110_v51 = vmin.u32 %v873_v20, %v3044_v28  ;;  %v954_v5 = vsel %vm944_vm7, %v951_v33, %v953_v52  ;;  %v957_v0 = vsel %vm945_vm6, %v939_v38, %v956_v29  ;;  %v949_v47 = vsel %vm945_vm6, %v933_v48, %v948_v44 }
 0x132   : > { %v958_v9 = vsel %vm944_vm7, %v955_v56, %v957_v0  ;;  %v3052_v8 = vmul.u32.u64.low %v959_v4, %v954_v5  ;;  %v3053_v2 = vmul.u32.u64.high %v959_v4, %v954_v5, %v3052_v8  ;;  %v797_v46 = vand.u32 3, %v796_v41 }
 0x133   : > { %v875_v43 = vclz %v2110_v51  ;;  %v3056_v39 = vmul.u32.u64.low %v959_v4, %v958_v9  ;;  %v3057_v27 = vmul.u32.u64.high %v959_v4, %v958_v9, %v3056_v39  ;;  %v1019_v60 = vshrl.u32 %v1018_v30, 23 }
 0x134   : > { %v950_v35 = vsel %vm944_vm7, %v947_v16, %v949_v47  ;;  %vm3062_vm8 = vcmp.le.f32.partialorder %v807_v21, 0.7853982  ;;  %v893_v48 = vsub.s32 4, %v3031_v53  ;;  %v969_v40 = vadd.s32 1, %v3053_v2  ;;  %v211_v16 = vld [vmem:[%s209_s10] sm:$0x3] }
 0x135   : > { %v2111_v6 = vadd.s32 4294967294, %v875_v43  ;;  %v2117_v49 = vadd.s32 4294967169, %v1019_v60  ;;  %vm799_vm9 = vcmp.eq.s32.totalorder %v797_v46, 0  ;;  %vm802_vm10 = vcmp.eq.s32.totalorder %v797_v46, 2 }
 0x136   : > { %vm809_vm11 = vcmp.lt.s32.totalorder %v2858_v23, 0  ;;  %v966_v31 = vmul.u32 %v959_v4, %v950_v35  ;;  %vm968_vm13 = vc.u32 %v3057_v27, %v3052_v8  ;;  %v863_v37 = vadd.s32 %v2997_v42, %v2994_v26 }
 0x137   : > { %vm2112_vm12 = vcmp.lt.s32.totalorder %v2111_v6, 0  ;;  %v1025_v21 = vadd.s32 1, %v2117_v49  ;;  %v970_v17 = vsel %vm968_vm13, %v969_v40, %v3053_v2  ;;  %v894_v30 = vsel %vm809_vm11, %v893_v48, %v3031_v53 }
 0x138   : > { %v878_v45 = vsel %vm2112_vm12, 0, %v2111_v6  ;;  %v971_v24 = vadd.s32 %v970_v17, %v966_v31  ;;  %v896_v51 = vsel %vm3062_vm8, 0, %v894_v30  ;;  %vm798_vm15 = vcmp.lt.s32.totalorder %v797_v46, 2 }
 0x139   : > { %v879_v7 = vsub.s32 32, %v878_v45  ;;  %v883_v38 = vsub.s32 4294967266, %v878_v45  ;;  %v880_v62 = vshll.u32 %v3044_v28, %v878_v45  ;;  %vm1026_vm14 = vcmp.gt.s32.totalorder %v1025_v21, 0 }
 0x13a   : > { %v2290_v41 = vpop.eup %2289  ;;  %v1027_v20 = vsel %vm1026_vm14, %v1025_v21, 0  ;;  %v972_v54 = vadd.s32 536870912, %v971_v24  ;;  %v1015_v28 = vand.u32 2147483647, %v2946_v34  ;;  %vm795_vm0 = vweird.f32 %v2665_v32 }
 0x13b   : > { %v2292_v4 = vpop.eup %2291  ;;  %v803_v26 = vxor.u32 2147483648, %v2290_v41  ;;  %v881_v42 = vshrl.u32 %v863_v37, %v879_v7  ;;  %v884_v33 = vadd.s32 127, %v883_v38  ;;  %v1029_v52 = vand.u32 31, %v1027_v20 }
 0x13c   : > { %v800_v44 = vxor.u32 2147483648, %v2292_v4  ;;  %v3088_v0 = vshrl.u32 %v972_v54, 30  ;;  %v3091_v39 = vadd.s32 3, %v896_v51  ;;  %v1022_v48 = vand.u32 8388607, %v1015_v28 }
 0x13d   : > { %v804_v56 = vsel %vm802_vm10, %v803_v26, %v2292_v4  ;;  %v882_v53 = vor.u32 %v881_v42, %v880_v62  ;;  %v885_v29 = vshll.u32 %v884_v33, 23  ;;  %v1030_v47 = vsub.s32 32, %v1029_v52 }
 0x13e   : > { %v801_v5 = vsel %vm799_vm9, %v2290_v41, %v800_v44  ;;  %v974_v60 = vshll.u32 %v3088_v0, 30  ;;  %v3099_v46 = vrot.slane %v211_v16, %v243_v11  ;;  %v3107_v45 = vrot.slane %v211_v16, %v247_v12 }
 0x13f   : > { %v805_v9 = vsel %vm798_vm15, %v801_v5, %v804_v56  ;;  %v886_v2 = vor.u32 4788187, %v885_v29  ;;  %v889_v35 = vcvt.s32.f32 %v882_v53  ;;  %v1033_v32 = vshrl.u32 %v2401_v61, %v1030_v47 }
 0x140   : > { %v806_v43 = vsel %vm795_vm0, nan, %v805_v9  ;;  %v3101_v40 = vsub.s32 %v971_v24, %v974_v60  ;;  %v1036_v49 = vshrl.u32 %v2402_v63, %v1030_v47  ;;  %v1028_v21 = vshrl.u32 %v1027_v20, 5 }
 0x141   : > { %v887_v6 = vand.u32 2147483647, %v886_v2  ;;  %1123 = vst [vmem:[%s2853_s7 + $0x20] sm:$0xff] %v806_v43  ;;  %v1032_v37 = vshll.u32 %v2400_v57, %v1029_v52  ;;  %v1039_v7 = vshrl.u32 %v2403_v1, %v1030_v47  ;;  %v1035_v11 = vshll.u32 %v2401_v61, %v1029_v52 }
 0x142   : > { %v977_v38 = vsub.s32 0, %v3101_v40  ;;  %v1038_v17 = vshll.u32 %v2402_v63, %v1029_v52  ;;  %v1042_v41 = vshrl.u32 %v2404_v3, %v1030_v47  ;;  %v1041_v30 = vshll.u32 %v2403_v1, %v1029_v52 }
 0x143   : > { %v890_v31 = vmul.f32 %v889_v35, %v887_v6  ;;  %v1044_v10 = vshll.u32 %v2404_v3, %v1029_v52  ;;  %v1045_v12 = vshrl.u32 %v2405_v15, %v1030_v47  ;;  %v1023_v4 = vor.u32 8388608, %v1022_v48 }
 0x144   : > { %v2114_v24 = vmin.u32 %v977_v38, %v3101_v40  ;;  %v1034_v26 = vor.u32 %v1033_v32, %v1032_v37  ;;  %v1037_v42 = vor.u32 %v1036_v49, %v1035_v11  ;;  %v1040_v20 = vor.u32 %v1039_v7, %v1038_v17 }
 0x145   : > { %v891_v62 = vxor.u32 2147483648, %v890_v31  ;;  %v1043_v44 = vor.u32 %v1042_v41, %v1041_v30  ;;  %v1046_v54 = vor.u32 %v1045_v12, %v1044_v10  ;;  %v967_v52 = vadd.s32 %v3052_v8, %v3057_v27 }
 0x146   : > { %v979_v53 = vclz %v2114_v24  ;;  %v1138_v29 = vmul.f32 %v3099_v46, %v2522_v14  ;;  %v1031_v51 = vshrl.u32 %v2400_v57, %v1030_v47  ;;  %vm1047_vm1 = vcmp.lt.s32.totalorder %v1028_v21, 1 }
 0x147   : > { %v892_v33 = vsel %vm809_vm11, %v891_v62, %v890_v31  ;;  %vm1049_vm2 = vcmp.lt.s32.totalorder %v1028_v21, 3  ;;  %vm1050_vm3 = vcmp.lt.s32.totalorder %v1028_v21, 4  ;;  %v1055_v5 = vsel %vm1047_vm1, %v1034_v26, %v1037_v42 }
 0x148   : > { %v895_v56 = vsel %vm3062_vm8, %v2858_v23, %v892_v33  ;;  %v2115_v16 = vadd.s32 4294967294, %v979_v53  ;;  %v1052_v9 = vsel %vm1050_vm3, %v1040_v20, 2102212464  ;;  %v1056_v59 = vsel %vm1050_vm3, %v1043_v44, 920167782 }
 0x149   : > { %2293 = vcosq.f32 %v895_v56  ;;  %v1059_v2 = vsel %vm1047_vm1, %v1037_v42, %v1040_v20  ;;  %v1060_v43 = vsel %vm1050_vm3, %v1046_v54, 1326507024  ;;  %vm1048_vm5 = vcmp.lt.s32.totalorder %v1028_v21, 2 }
 0x14a   : > { %2295 = vsinq.f32 %v895_v56  ;;  %vm2116_vm4 = vcmp.lt.s32.totalorder %v2115_v16, 0  ;;  %v1057_v8 = vsel %vm1049_vm2, %v1040_v20, %v1056_v59  ;;  %v1061_v27 = vsel %vm1049_vm2, %v1043_v44, %v1060_v43 }
 0x14b   : > { %v982_v60 = vsel %vm2116_vm4, 0, %v2115_v16  ;;  %v1058_v47 = vsel %vm1048_vm5, %v1055_v5, %v1057_v8  ;;  %v1062_v6 = vsel %vm1048_vm5, %v1059_v2, %v1061_v27  ;;  %v1063_v35 = vshll.u32 %v1023_v4, 8 }
 0x14c   : > { %v983_v48 = vsub.s32 32, %v982_v60  ;;  %v987_v32 = vsub.s32 4294967266, %v982_v60  ;;  %v1051_v49 = vsel %vm1047_vm1, %v1031_v51, %v1034_v26  ;;  %v1053_v31 = vsel %vm1049_vm2, %v1037_v42, %v1052_v9 }
 0x14d   : > { %v3137_v37 = vmul.u32.u64.low %v1063_v35, %v1062_v6  ;;  %v3138_v7 = vmul.u32.u64.high %v1063_v35, %v1062_v6, %v3137_v37  ;;  %v3140_v38 = vmul.u32.u64.low %v1063_v35, %v1058_v47  ;;  %v3141_v11 = vmul.u32.u64.high %v1063_v35, %v1058_v47, %v3140_v38 }
 0x14e   : > { %v984_v17 = vshll.u32 %v3101_v40, %v982_v60  ;;  %v985_v41 = vshrl.u32 %v967_v52, %v983_v48  ;;  %v988_v62 = vadd.s32 127, %v987_v32  ;;  %v3146_v30 = vadd.f32 %v1138_v29, %v2540_v22 }
 0x14f   : > { %v997_v10 = vsub.s32 4, %v3088_v0  ;;  %v1054_v12 = vsel %vm1048_vm5, %v1051_v49, %v1053_v31  ;;  %v901_v24 = vand.u32 3, %v3091_v39  ;;  %vm899_vm6 = vweird.f32 %v2858_v23 }
 0x150   : > { %v986_v4 = vor.u32 %v985_v41, %v984_v17  ;;  %v989_v26 = vshll.u32 %v988_v62, 23  ;;  %vm3154_vm7 = vcmp.le.f32.partialorder %v911_v36, 0.7853982  ;;  %vm1072_vm8 = vc.u32 %v3138_v7, %v3140_v38 }
 0x151   : > { %v1073_v40 = vadd.s32 1, %v3141_v11  ;;  %v1139_v21 = vmul.f32 %v3107_v45, %v2522_v14  ;;  %vm913_vm9 = vcmp.lt.s32.totalorder %v2915_v55, 0  ;;  %v1070_v33 = vmul.u32 %v1063_v35, %v1054_v12 }
 0x152   : > { %v990_v39 = vor.u32 4788187, %v989_v26  ;;  %v1154_v20 = vand.u32 2147483647, %v3146_v30  ;;  %v998_v36 = vsel %vm913_vm9, %v997_v10, %v3088_v0  ;;  %v1157_v56 = vand.u32 2139095040, %v3146_v30 }
 0x153   : > { %v1074_v44 = vsel %vm1072_vm8, %v1073_v40, %v3141_v11  ;;  %v3170_v54 = vadd.f32 %v1139_v21, %v2540_v22  ;;  %vm903_vm10 = vcmp.eq.s32.totalorder %v901_v24, 0  ;;  %v993_v53 = vcvt.s32.f32 %v986_v4 }
 0x154   : > { %v991_v14 = vand.u32 2147483647, %v990_v39  ;;  %v1075_v29 = vadd.s32 %v1074_v44, %v1070_v33  ;;  %vm906_vm11 = vcmp.eq.s32.totalorder %v901_v24, 2  ;;  %v1158_v5 = vshrl.u32 %v1157_v56, 23 }
 0x155   : > { %v1161_v9 = vand.u32 8388607, %v1154_v20  ;;  %v1000_v22 = vsel %vm3154_vm7, 0, %v998_v36  ;;  %v1258_v27 = vand.u32 2147483647, %v3170_v54  ;;  %v1261_v60 = vand.u32 2139095040, %v3170_v54 }
 0x156   : > { %v2294_v52 = vpop.eup %2293  ;;  %v994_v59 = vmul.f32 %v993_v53, %v991_v14  ;;  %v1076_v2 = vadd.s32 536870912, %v1075_v29  ;;  %v2121_v8 = vadd.s32 4294967169, %v1158_v5  ;;  %vm902_vm12 = vcmp.lt.s32.totalorder %v901_v24, 2 }
 0x157   : > { %v2296_v51 = vpop.eup %2295  ;;  %v907_v16 = vxor.u32 2147483648, %v2294_v52  ;;  %v1004_v32 = vadd.s32 3, %v1000_v22  ;;  %v1162_v49 = vor.u32 8388608, %v1161_v9  ;;  %v1262_v41 = vshrl.u32 %v1261_v60, 23 }
 0x158   : > { %v904_v0 = vxor.u32 2147483648, %v2296_v51  ;;  %v995_v6 = vxor.u32 2147483648, %v994_v59  ;;  %v1077_v35 = vshrl.u32 %v1076_v2, 30  ;;  %v1164_v31 = vadd.s32 1, %v2121_v8 }
 0x159   : > { %v908_v43 = vsel %vm906_vm11, %v907_v16, %v2296_v51  ;;  %v3190_v12 = vand.u32 8388607, %v1258_v27  ;;  %vm1017_vm14 = vcmp.lt.s32.totalorder %v2946_v34, 0  ;;  %vm3197_vm15 = vcmp.le.f32.partialorder %v1015_v28, 0.7853982 }
 0x15a   : > { %v905_v47 = vsel %vm903_vm10, %v2294_v52, %v904_v0  ;;  %v996_v11 = vsel %vm913_vm9, %v995_v6, %v994_v59  ;;  %v1078_v17 = vshll.u32 %v1077_v35, 30  ;;  %v1101_v10 = vsub.s32 4, %v1077_v35 }
 0x15b   : > { %v909_v48 = vsel %vm902_vm12, %v905_v47, %v908_v43  ;;  %v999_v62 = vsel %vm3154_vm7, %v2915_v55, %v996_v11  ;;  %vm1165_vm13 = vcmp.gt.s32.totalorder %v1164_v31, 0  ;;  %v3203_v26 = vmul.f32 %v3099_v46, %v2534_v19 }
 0x15c   : > { %v910_v37 = vsel %vm899_vm6, nan, %v909_v48  ;;  %2297 = vcosq.f32 %v999_v62  ;;  %v3193_v23 = vsub.s32 %v1075_v29, %v1078_v17  ;;  %v1166_v24 = vsel %vm1165_vm13, %v1164_v31, 0 }
 0x15d   : > { %1124 = vst [vmem:[%s2853_s7 + $0x28] sm:$0xff] %v910_v37  ;;  %2299 = vsinq.f32 %v999_v62  ;;  %v1168_v42 = vand.u32 31, %v1166_v24  ;;  %v3205_v40 = vand.u32 3, %v1004_v32  ;;  %v1071_v21 = vadd.s32 %v3140_v38, %v3138_v7 }
 0x15e   : > { %v1081_v39 = vsub.s32 0, %v3193_v23  ;;  %v2125_v33 = vadd.s32 4294967169, %v1262_v41  ;;  %v3212_v36 = vsel %vm1017_vm14, %v1101_v10, %v1077_v35  ;;  %v3214_v44 = vshll.u32 %v1162_v49, 8 }
 0x15f   : > { %v1169_v28 = vsub.s32 32, %v1168_v42  ;;  %v1266_v56 = vor.u32 8388608, %v3190_v12  ;;  %v3218_v14 = vshrl.u32 %v1166_v24, 5  ;;  %v1171_v53 = vshll.u32 %v2400_v57, %v1168_v42 }
 0x160   : > { %v2118_v52 = vmin.u32 %v1081_v39, %v3193_v23  ;;  %v1174_v7 = vshll.u32 %v2401_v61, %v1168_v42  ;;  %v1177_v51 = vshll.u32 %v2402_v63, %v1168_v42  ;;  %v1104_v9 = vsel %vm3197_vm15, 0, %v3212_v36 }
 0x161   : > { %v1172_v38 = vshrl.u32 %v2401_v61, %v1169_v28  ;;  %v1175_v29 = vshrl.u32 %v2402_v63, %v1169_v28  ;;  %v1178_v16 = vshrl.u32 %v2403_v1, %v1169_v28  ;;  %v1180_v0 = vshll.u32 %v2403_v1, %v1168_v42 }
 0x162   : > { %v1083_v5 = vclz %v2118_v52  ;;  %v1268_v59 = vadd.s32 1, %v2125_v33  ;;  %vm1010_vm0 = vcmp.eq.s32.totalorder %v3205_v40, 2  ;;  %v1181_v8 = vshrl.u32 %v2404_v3, %v1169_v28 }
 0x163   : > { %v1173_v22 = vor.u32 %v1172_v38, %v1171_v53  ;;  %v1176_v2 = vor.u32 %v1175_v29, %v1174_v7  ;;  %v1179_v43 = vor.u32 %v1178_v16, %v1177_v51  ;;  %vm1007_vm1 = vcmp.eq.s32.totalorder %v3205_v40, 0 }
 0x164   : > { %v2119_v60 = vadd.s32 4294967294, %v1083_v5  ;;  %v1170_v47 = vshrl.u32 %v2400_v57, %v1169_v28  ;;  %v1183_v6 = vshll.u32 %v2404_v3, %v1168_v42  ;;  %v1184_v35 = vshrl.u32 %v2405_v15, %v1169_v28 }
 0x165   : > { %vm1006_vm2 = vcmp.lt.s32.totalorder %v3205_v40, 2  ;;  %v1182_v48 = vor.u32 %v1181_v8, %v1180_v0  ;;  %vm1186_vm3 = vcmp.lt.s32.totalorder %v3218_v14, 1  ;;  %vm1187_vm4 = vcmp.lt.s32.totalorder %v3218_v14, 2 }
 0x166   : > { %vm1189_vm5 = vcmp.lt.s32.totalorder %v3218_v14, 4  ;;  %vm1003_vm6 = vweird.f32 %v2915_v55  ;;  %vm2120_vm7 = vcmp.lt.s32.totalorder %v2119_v60, 0  ;;  %v1185_v32 = vor.u32 %v1184_v35, %v1183_v6 }
 0x167   : > { %vm1188_vm8 = vcmp.lt.s32.totalorder %v3218_v14, 3  ;;  %v1191_v49 = vsel %vm1189_vm5, %v1179_v43, 2102212464  ;;  %v1086_v31 = vsel %vm2120_vm7, 0, %v2119_v60  ;;  %v1190_v37 = vsel %vm1186_vm3, %v1170_v47, %v1173_v22 }
 0x168   : > { %v1194_v11 = vsel %vm1186_vm3, %v1173_v22, %v1176_v2  ;;  %v1195_v17 = vsel %vm1189_vm5, %v1182_v48, 920167782  ;;  %v1087_v41 = vsub.s32 32, %v1086_v31  ;;  %v1091_v62 = vsub.s32 4294967266, %v1086_v31 }
 0x169   : > { %v1192_v10 = vsel %vm1188_vm8, %v1176_v2, %v1191_v49  ;;  %v1198_v24 = vsel %vm1186_vm3, %v1176_v2, %v1179_v43  ;;  %v2298_v42 = vpop.eup %2297  ;;  %v1088_v39 = vshll.u32 %v3193_v23, %v1086_v31  ;;  %v1196_v33 = vsel %vm1188_vm8, %v1179_v43, %v1195_v17 }
 0x16a   : > { %v1199_v36 = vsel %vm1189_vm5, %v1185_v32, 1326507024  ;;  %vm1269_vm9 = vcmp.gt.s32.totalorder %v1268_v59, 0  ;;  %v2300_v28 = vpop.eup %2299  ;;  %v1011_v52 = vxor.u32 2147483648, %v2298_v42  ;;  %v1089_v53 = vshrl.u32 %v1071_v21, %v1087_v41 }
 0x16b   : > { %v1092_v7 = vadd.s32 127, %v1091_v62  ;;  %v1197_v38 = vsel %vm1187_vm4, %v1194_v11, %v1196_v33  ;;  %v1008_v29 = vxor.u32 2147483648, %v2300_v28  ;;  %v1200_v51 = vsel %vm1188_vm8, %v1182_v48, %v1199_v36 }
 0x16c   : > { %v3258_v23 = vmul.u32.u64.low %v3214_v44, %v1197_v38  ;;  %v3259_v16 = vmul.u32.u64.high %v3214_v44, %v1197_v38, %v3258_v23  ;;  %v1012_v5 = vsel %vm1010_vm0, %v1011_v52, %v2300_v28  ;;  %v1090_v0 = vor.u32 %v1089_v53, %v1088_v39 }
 0x16d   : > { %v1093_v22 = vshll.u32 %v1092_v7, 23  ;;  %v1201_v21 = vsel %vm1187_vm4, %v1198_v24, %v1200_v51  ;;  %v1009_v2 = vsel %vm1007_vm1, %v2298_v42, %v1008_v29  ;;  %v1270_v60 = vsel %vm1269_vm9, %v1268_v59, 0 }
 0x16e   : > { %v3269_v43 = vmul.u32.u64.low %v3214_v44, %v1201_v21  ;;  %v3270_v8 = vmul.u32.u64.high %v3214_v44, %v1201_v21, %v3269_v43  ;;  %v1013_v47 = vsel %vm1006_vm2, %v1009_v2, %v1012_v5  ;;  %v3277_v35 = vmul.f32 %v3107_v45, %v2534_v19 }
 0x16f   : > { %v1094_v6 = vor.u32 4788187, %v1093_v22  ;;  %v1193_v48 = vsel %vm1187_vm4, %v1190_v37, %v1192_v10  ;;  %v1014_v32 = vsel %vm1003_vm6, nan, %v1013_v47  ;;  %v3285_v49 = vadd.f32 %v3203_v26, %v2548_v25 }
 0x170   : > { %v1212_v59 = vadd.s32 1, %v3259_v16  ;;  %v1272_v31 = vand.u32 31, %v1270_v60  ;;  %v1097_v11 = vcvt.s32.f32 %v1090_v0  ;;  %v1108_v17 = vadd.s32 3, %v1104_v9  ;;  %1125 = vst [vmem:[%s2853_s7 + $0x30] sm:$0xff] %v1014_v32 }
 0x171   : > { %v1095_v40 = vand.u32 2147483647, %v1094_v6  ;;  %v3291_v19 = vshll.u32 %v1266_v56, 8  ;;  %v1209_v14 = vmul.u32 %v3214_v44, %v1193_v48  ;;  %vm1211_vm10 = vc.u32 %v3270_v8, %v3258_v23 }
 0x172   : > { %v1271_v55 = vshrl.u32 %v1270_v60, 5  ;;  %v1273_v37 = vsub.s32 32, %v1272_v31  ;;  %v1213_v41 = vsel %vm1211_vm10, %v1212_v59, %v3259_v16  ;;  %v1275_v62 = vshll.u32 %v2400_v57, %v1272_v31 }
 0x173   : > { %v1098_v26 = vmul.f32 %v1097_v11, %v1095_v40  ;;  %v1278_v10 = vshll.u32 %v2401_v61, %v1272_v31  ;;  %v1214_v9 = vadd.s32 %v1213_v41, %v1209_v14  ;;  %v1281_v56 = vshll.u32 %v2402_v63, %v1272_v31 }
 0x174   : > { %v1276_v24 = vshrl.u32 %v2401_v61, %v1273_v37  ;;  %v1279_v12 = vshrl.u32 %v2402_v63, %v1273_v37  ;;  %v1282_v42 = vshrl.u32 %v2403_v1, %v1273_v37  ;;  %v1284_v39 = vshll.u32 %v2403_v1, %v1272_v31 }
 0x175   : > { %v1099_v44 = vxor.u32 2147483648, %v1098_v26  ;;  %v1285_v33 = vshrl.u32 %v2404_v3, %v1273_v37  ;;  %v1215_v36 = vadd.s32 536870912, %v1214_v9  ;;  %v1287_v53 = vshll.u32 %v2404_v3, %v1272_v31 }
 0x176   : > { %v1277_v28 = vor.u32 %v1276_v24, %v1275_v62  ;;  %v1280_v52 = vor.u32 %v1279_v12, %v1278_v10  ;;  %v1283_v38 = vor.u32 %v1282_v42, %v1281_v56  ;;  %v1288_v51 = vshrl.u32 %v2405_v15, %v1273_v37 }
 0x177   : > { %v1100_v7 = vsel %vm1017_vm14, %v1099_v44, %v1098_v26  ;;  %v1286_v29 = vor.u32 %v1285_v33, %v1284_v39  ;;  %v1216_v5 = vshrl.u32 %v1215_v36, 30  ;;  %vm1290_vm11 = vcmp.lt.s32.totalorder %v1271_v55, 1 }
 0x178   : > { %v1103_v16 = vsel %vm3197_vm15, %v2946_v34, %v1100_v7  ;;  %vm1292_vm12 = vcmp.lt.s32.totalorder %v1271_v55, 3  ;;  %v1274_v0 = vshrl.u32 %v2400_v57, %v1273_v37  ;;  %v1289_v22 = vor.u32 %v1288_v51, %v1287_v53 }
 0x179   : > { %2301 = vcosq.f32 %v1103_v16  ;;  %vm1293_vm13 = vcmp.lt.s32.totalorder %v1271_v55, 4  ;;  %v1217_v21 = vshll.u32 %v1216_v5, 30  ;;  %v1298_v43 = vsel %vm1290_vm11, %v1277_v28, %v1280_v52 }
 0x17a   : > { %2303 = vsinq.f32 %v1103_v16  ;;  %v1295_v2 = vsel %vm1293_vm13, %v1283_v38, 2102212464  ;;  %v1240_v60 = vsub.s32 4, %v1216_v5  ;;  %v1299_v47 = vsel %vm1293_vm13, %v1286_v29, 920167782 }
 0x17b   : > { %v1302_v6 = vsel %vm1290_vm11, %v1280_v52, %v1283_v38  ;;  %v1303_v48 = vsel %vm1293_vm13, %v1289_v22, 1326507024  ;;  %v3315_v4 = vsub.s32 %v1214_v9, %v1217_v21  ;;  %vm1291_vm14 = vcmp.lt.s32.totalorder %v1271_v55, 2 }
 0x17c   : > { %v1300_v32 = vsel %vm1292_vm12, %v1283_v38, %v1299_v47  ;;  %v1304_v59 = vsel %vm1292_vm12, %v1286_v29, %v1303_v48  ;;  %vm1156_vm15 = vcmp.lt.s32.totalorder %v3146_v30, 0  ;;  %v1294_v31 = vsel %vm1290_vm11, %v1274_v0, %v1277_v28 }
 0x17d   : > { %v1301_v40 = vsel %vm1291_vm14, %v1298_v43, %v1300_v32  ;;  %v1305_v11 = vsel %vm1291_vm14, %v1302_v6, %v1304_v59  ;;  %v1220_v14 = vsub.s32 0, %v3315_v4  ;;  %v1296_v37 = vsel %vm1292_vm12, %v1280_v52, %v1295_v2 }
 0x17e   : > { %v3326_v26 = vmul.u32.u64.low %v3291_v19, %v1305_v11  ;;  %v3327_v41 = vmul.u32.u64.high %v3291_v19, %v1305_v11, %v3326_v26  ;;  %v3331_v62 = vadd.f32 %v3277_v35, %v2548_v25  ;;  %v1241_v10 = vsel %vm1156_vm15, %v1240_v60, %v1216_v5 }
 0x17f   : > { %v3336_v9 = vmul.u32.u64.low %v3291_v19, %v1301_v40  ;;  %v3337_v24 = vmul.u32.u64.high %v3291_v19, %v1301_v40, %v3336_v9  ;;  %v1109_v12 = vand.u32 3, %v1108_v17  ;;  %v2122_v56 = vmin.u32 %v1220_v14, %v3315_v4 }
 0x180   : > { %v1362_v44 = vand.u32 2147483647, %v3285_v49  ;;  %v1365_v42 = vand.u32 2139095040, %v3285_v49  ;;  %vm3344_vm0 = vcmp.le.f32.partialorder %v1154_v20, 0.7853982  ;;  %v1297_v25 = vsel %vm1291_vm14, %v1294_v31, %v1296_v37 }
 0x181   : > { %v1222_v35 = vclz %v2122_v56  ;;  %v1243_v33 = vsel %vm3344_vm0, 0, %v1241_v10  ;;  %vm1107_vm1 = vweird.f32 %v2946_v34  ;;  %vm1315_vm2 = vc.u32 %v3327_v41, %v3336_v9 }
 0x182   : > { %v1316_v17 = vadd.s32 1, %v3337_v24  ;;  %v1366_v36 = vshrl.u32 %v1365_v42, 23  ;;  %v1469_v28 = vand.u32 2139095040, %v3331_v62  ;;  %vm1110_vm3 = vcmp.lt.s32.totalorder %v1109_v12, 2 }
 0x183   : > { %v2123_v20 = vadd.s32 4294967294, %v1222_v35  ;;  %v1313_v52 = vmul.u32 %v3291_v19, %v1297_v25  ;;  %v1369_v55 = vand.u32 8388607, %v1362_v44  ;;  %vm1111_vm4 = vcmp.eq.s32.totalorder %v1109_v12, 0 }
 0x184   : > { %vm1114_vm5 = vcmp.eq.s32.totalorder %v1109_v12, 2  ;;  %v1317_v53 = vsel %vm1315_vm2, %v1316_v17, %v3337_v24  ;;  %v2129_v7 = vadd.s32 4294967169, %v1366_v36  ;;  %v1210_v29 = vadd.s32 %v3258_v23, %v3270_v8 }
 0x185   : > { %vm2124_vm6 = vcmp.lt.s32.totalorder %v2123_v20, 0  ;;  %v1247_v51 = vadd.s32 3, %v1243_v33  ;;  %v1318_v16 = vadd.s32 %v1317_v53, %v1313_v52  ;;  %v1470_v19 = vshrl.u32 %v1469_v28, 23 }
 0x186   : > { %v2302_v38 = vpop.eup %2301  ;;  %v1225_v22 = vsel %vm2124_vm6, 0, %v2123_v20  ;;  %v1372_v21 = vadd.s32 1, %v2129_v7  ;;  %v1370_v47 = vor.u32 8388608, %v1369_v55  ;;  %vm1260_vm8 = vcmp.lt.s32.totalorder %v3170_v54, 0 }
 0x187   : > { %v2304_v5 = vpop.eup %2303  ;;  %v1115_v0 = vxor.u32 2147483648, %v2302_v38  ;;  %v1226_v43 = vsub.s32 32, %v1225_v22  ;;  %v1230_v60 = vsub.s32 4294967266, %v1225_v22  ;;  %v1227_v48 = vshll.u32 %v3315_v4, %v1225_v22 }
 0x188   : > { %v1112_v2 = vxor.u32 2147483648, %v2304_v5  ;;  %v1319_v32 = vadd.s32 536870912, %v1318_v16  ;;  %vm1373_vm7 = vcmp.gt.s32.totalorder %v1372_v21, 0  ;;  %v2133_v37 = vadd.s32 4294967169, %v1470_v19 }
 0x189   : > { %v1116_v6 = vsel %vm1114_vm5, %v1115_v0, %v2304_v5  ;;  %v1228_v8 = vshrl.u32 %v1210_v29, %v1226_v43  ;;  %v1231_v59 = vadd.s32 127, %v1230_v60  ;;  %v1374_v31 = vsel %vm1373_vm7, %v1372_v21, 0 }
 0x18a   : > { %v1113_v23 = vsel %vm1111_vm4, %v2302_v38, %v1112_v2  ;;  %v1320_v11 = vshrl.u32 %v1319_v32, 30  ;;  %v1376_v14 = vand.u32 31, %v1374_v31  ;;  %v3370_v4 = vmul.f32 %v3099_v46, %v2520_v13 }
 0x18b   : > { %v1117_v40 = vsel %vm1110_vm3, %v1113_v23, %v1116_v6  ;;  %v1229_v10 = vor.u32 %v1228_v8, %v1227_v48  ;;  %v1232_v24 = vshll.u32 %v1231_v59, 23  ;;  %v3373_v12 = vand.u32 3, %v1247_v51 }
 0x18c   : > { %v1118_v26 = vsel %vm1107_vm1, nan, %v1117_v40  ;;  %v1321_v56 = vshll.u32 %v1320_v11, 30  ;;  %v1377_v42 = vsub.s32 32, %v1376_v14  ;;  %v1314_v35 = vadd.s32 %v3336_v9, %v3327_v41 }
 0x18d   : > { %1126 = vst [vmem:[%s2853_s7 + $0x38] sm:$0xff] %v1118_v26  ;;  %v1233_v25 = vor.u32 4788187, %v1232_v24  ;;  %v3376_v33 = vshll.u32 %v1370_v47, 8  ;;  %v1375_v17 = vshrl.u32 %v1374_v31, 5  ;;  %v1476_v28 = vadd.s32 1, %v2133_v37 }
 0x18e   : > { %v3378_v34 = vsub.s32 %v1318_v16, %v1321_v56  ;;  %v1380_v36 = vshrl.u32 %v2401_v61, %v1377_v42  ;;  %v1236_v52 = vcvt.s32.f32 %v1229_v10  ;;  %v1383_v55 = vshrl.u32 %v2402_v63, %v1377_v42 }
 0x18f   : > { %v1234_v20 = vand.u32 2147483647, %v1233_v25  ;;  %v1386_v53 = vshrl.u32 %v2403_v1, %v1377_v42  ;;  %v1344_v38 = vsub.s32 4, %v1320_v11  ;;  %v1379_v29 = vshll.u32 %v2400_v57, %v1376_v14 }
 0x190   : > { %v1324_v7 = vsub.s32 0, %v3378_v34  ;;  %v1382_v41 = vshll.u32 %v2401_v61, %v1376_v14  ;;  %v1385_v51 = vshll.u32 %v2402_v63, %v1376_v14  ;;  %v1388_v16 = vshll.u32 %v2403_v1, %v1376_v14 }
 0x191   : > { %v1237_v9 = vmul.f32 %v1236_v52, %v1234_v20  ;;  %v1389_v5 = vshrl.u32 %v2404_v3, %v1377_v42  ;;  %v1381_v22 = vor.u32 %v1380_v36, %v1379_v29  ;;  %v1392_v19 = vshrl.u32 %v2405_v15, %v1377_v42 }
 0x192   : > { %v2126_v0 = vmin.u32 %v1324_v7, %v3378_v34  ;;  %v1384_v21 = vor.u32 %v1383_v55, %v1382_v41  ;;  %v1387_v43 = vor.u32 %v1386_v53, %v1385_v51  ;;  %v1391_v47 = vshll.u32 %v2404_v3, %v1376_v14 }
 0x193   : > { %v1238_v2 = vxor.u32 2147483648, %v1237_v9  ;;  %v1390_v60 = vor.u32 %v1389_v5, %v1388_v16  ;;  %v1345_v48 = vsel %vm1260_vm8, %v1344_v38, %v1320_v11  ;;  %v1378_v32 = vshrl.u32 %v2400_v57, %v1377_v42 }
 0x194   : > { %v1326_v6 = vclz %v2126_v0  ;;  %vm1477_vm9 = vcmp.gt.s32.totalorder %v1476_v28, 0  ;;  %v1393_v8 = vor.u32 %v1392_v19, %v1391_v47  ;;  %vm1394_vm10 = vcmp.lt.s32.totalorder %v1375_v17, 1 }
 0x195   : > { %v1239_v23 = vsel %vm1156_vm15, %v1238_v2, %v1237_v9  ;;  %vm1395_vm11 = vcmp.lt.s32.totalorder %v1375_v17, 2  ;;  %vm1396_vm12 = vcmp.lt.s32.totalorder %v1375_v17, 3  ;;  %vm1397_vm13 = vcmp.lt.s32.totalorder %v1375_v17, 4 }
 0x196   : > { %v1242_v59 = vsel %vm3344_vm0, %v3146_v30, %v1239_v23  ;;  %v2127_v31 = vadd.s32 4294967294, %v1326_v6  ;;  %v1399_v40 = vsel %vm1397_vm13, %v1387_v43, 2102212464  ;;  %v1402_v11 = vsel %vm1394_vm10, %v1381_v22, %v1384_v21 }
 0x197   : > { %2305 = vcosq.f32 %v1242_v59  ;;  %v1403_v14 = vsel %vm1397_vm13, %v1390_v60, 920167782  ;;  %v1398_v37 = vsel %vm1394_vm10, %v1378_v32, %v1381_v22  ;;  %v1406_v39 = vsel %vm1394_vm10, %v1384_v21, %v1387_v43 }
 0x198   : > { %2307 = vsinq.f32 %v1242_v59  ;;  %vm2128_vm14 = vcmp.lt.s32.totalorder %v2127_v31, 0  ;;  %v1404_v26 = vsel %vm1396_vm12, %v1387_v43, %v1403_v14  ;;  %v1407_v56 = vsel %vm1397_vm13, %v1393_v8, 1326507024 }
 0x199   : > { %v1329_v10 = vsel %vm2128_vm14, 0, %v2127_v31  ;;  %v1405_v24 = vsel %vm1395_vm11, %v1402_v11, %v1404_v26  ;;  %v1400_v36 = vsel %vm1396_vm12, %v1384_v21, %v1399_v40  ;;  %v1408_v20 = vsel %vm1396_vm12, %v1390_v60, %v1407_v56 }
 0x19a   : > { %v1330_v42 = vsub.s32 32, %v1329_v10  ;;  %v1334_v25 = vsub.s32 4294967266, %v1329_v10  ;;  %v1331_v52 = vshll.u32 %v3378_v34, %v1329_v10  ;;  %v1409_v55 = vsel %vm1395_vm11, %v1406_v39, %v1408_v20 }
 0x19b   : > { %v3410_v53 = vmul.u32.u64.low %v3376_v33, %v1405_v24  ;;  %v3411_v7 = vmul.u32.u64.high %v3376_v33, %v1405_v24, %v3410_v53  ;;  %v3415_v41 = vmul.u32.u64.low %v3376_v33, %v1409_v55  ;;  %v3416_v9 = vmul.u32.u64.high %v3376_v33, %v1409_v55, %v3415_v41 }
 0x19c   : > { %v1332_v38 = vshrl.u32 %v1314_v35, %v1330_v42  ;;  %v1335_v29 = vadd.s32 127, %v1334_v25  ;;  %v3420_v51 = vmul.f32 %v3107_v45, %v2520_v13  ;;  %v1401_v16 = vsel %vm1395_vm11, %v1398_v37, %v1400_v36 }
 0x19d   : > { %v1466_v34 = vand.u32 2147483647, %v3331_v62  ;;  %v1478_v5 = vsel %vm1477_vm9, %v1476_v28, 0  ;;  %vm3427_vm15 = vcmp.le.f32.partialorder %v1258_v27, 0.7853982  ;;  %v3433_v19 = vmul.f32 %v3099_v46, %v2532_v18 }
 0x19e   : > { %v1333_v35 = vor.u32 %v1332_v38, %v1331_v52  ;;  %v1336_v22 = vshll.u32 %v1335_v29, 23  ;;  %v1480_v21 = vand.u32 31, %v1478_v5  ;;  %v3437_v13 = vadd.f32 %v3370_v4, %v2647_v50 }
 0x19f   : > { %v1347_v17 = vsel %vm3427_vm15, 0, %v1345_v48  ;;  %v1420_v28 = vadd.s32 1, %v3411_v7  ;;  %vm1249_vm0 = vcmp.lt.s32.totalorder %v3373_v12, 2  ;;  %vm1250_vm1 = vcmp.eq.s32.totalorder %v3373_v12, 0 }
 0x1a0   : > { %v1337_v27 = vor.u32 4788187, %v1336_v22  ;;  %v1417_v2 = vmul.u32 %v3376_v33, %v1401_v16  ;;  %vm1419_vm2 = vc.u32 %v3416_v9, %v3410_v53  ;;  %vm1246_vm3 = vweird.f32 %v3146_v30 }
 0x1a1   : > { %vm1253_vm4 = vcmp.eq.s32.totalorder %v3373_v12, 2  ;;  %v1421_v46 = vsel %vm1419_vm2, %v1420_v28, %v3411_v7  ;;  %v1473_v4 = vand.u32 8388607, %v1466_v34  ;;  %v1481_v43 = vsub.s32 32, %v1480_v21 }
 0x1a2   : > { %v1338_v60 = vand.u32 2147483647, %v1337_v27  ;;  %v1340_v47 = vcvt.s32.f32 %v1333_v35  ;;  %v1351_v6 = vadd.s32 3, %v1347_v17  ;;  %v1422_v48 = vadd.s32 %v1421_v46, %v1417_v2 }
 0x1a3   : > { %v3452_v32 = vshrl.u32 %v1478_v5, 5  ;;  %v1483_v33 = vshll.u32 %v2400_v57, %v1480_v21  ;;  %v1484_v23 = vshrl.u32 %v2401_v61, %v1481_v43  ;;  %v1487_v8 = vshrl.u32 %v2402_v63, %v1481_v43 }
 0x1a4   : > { %v2306_v59 = vpop.eup %2305  ;;  %v1341_v31 = vmul.f32 %v1340_v47, %v1338_v60  ;;  %v1423_v40 = vadd.s32 536870912, %v1422_v48  ;;  %v1486_v11 = vshll.u32 %v2401_v61, %v1480_v21  ;;  %v1490_v14 = vshrl.u32 %v2403_v1, %v1481_v43 }
 0x1a5   : > { %v2308_v37 = vpop.eup %2307  ;;  %v1254_v26 = vxor.u32 2147483648, %v2306_v59  ;;  %v1489_v10 = vshll.u32 %v2402_v63, %v1480_v21  ;;  %v1492_v24 = vshll.u32 %v2403_v1, %v1480_v21  ;;  %v1493_v39 = vshrl.u32 %v2404_v3, %v1481_v43 }
 0x1a6   : > { %v1251_v56 = vxor.u32 2147483648, %v2308_v37  ;;  %v1342_v42 = vxor.u32 2147483648, %v1341_v31  ;;  %v3462_v25 = vshrl.u32 %v1423_v40, 30  ;;  %v1495_v36 = vshll.u32 %v2404_v3, %v1480_v21 }
 0x1a7   : > { %v1255_v20 = vsel %vm1253_vm4, %v1254_v26, %v2308_v37  ;;  %v1485_v52 = vor.u32 %v1484_v23, %v1483_v33  ;;  %v1488_v55 = vor.u32 %v1487_v8, %v1486_v11  ;;  %v1496_v7 = vshrl.u32 %v2405_v15, %v1481_v43 }
 0x1a8   : > { %v1252_v38 = vsel %vm1250_vm1, %v2306_v59, %v1251_v56  ;;  %v1343_v29 = vsel %vm1260_vm8, %v1342_v42, %v1341_v31  ;;  %v1425_v41 = vshll.u32 %v3462_v25, 30  ;;  %v1491_v16 = vor.u32 %v1490_v14, %v1489_v10 }
 0x1a9   : > { %v1256_v5 = vsel %vm1249_vm0, %v1252_v38, %v1255_v20  ;;  %v1346_v35 = vsel %vm3427_vm15, %v3170_v54, %v1343_v29  ;;  %v1494_v22 = vor.u32 %v1493_v39, %v1492_v24  ;;  %v1497_v21 = vor.u32 %v1496_v7, %v1495_v36 }
 0x1aa   : > { %v1257_v17 = vsel %vm1246_vm3, nan, %v1256_v5  ;;  %2309 = vcosq.f32 %v1346_v35  ;;  %v3480_v28 = vsub.s32 %v1422_v48, %v1425_v41  ;;  %v1474_v27 = vor.u32 8388608, %v1473_v4 }
 0x1ab   : > { %2311 = vsinq.f32 %v1346_v35  ;;  %v3482_v2 = vand.u32 3, %v1351_v6  ;;  %vm1498_vm5 = vcmp.lt.s32.totalorder %v3452_v32, 1  ;;  %v1573_v12 = vand.u32 2139095040, %v3437_v13  ;;  %1986 = vst [vmem:[%s2853_s7 + $0x40] sm:$0xff] %v1257_v17 }
 0x1ac   : > { %v1428_v0 = vsub.s32 0, %v3480_v28  ;;  %vm1500_vm6 = vcmp.lt.s32.totalorder %v3452_v32, 3  ;;  %vm1501_vm7 = vcmp.lt.s32.totalorder %v3452_v32, 4  ;;  %v1506_v30 = vsel %vm1498_vm5, %v1485_v52, %v1488_v55 }
 0x1ad   : > { %v1482_v46 = vshrl.u32 %v2400_v57, %v1481_v43  ;;  %v1503_v4 = vsel %vm1501_vm7, %v1491_v16, 2102212464  ;;  %v1507_v60 = vsel %vm1501_vm7, %v1494_v22, 920167782  ;;  %v1511_v47 = vsel %vm1501_vm7, %v1497_v21, 1326507024 }
 0x1ae   : > { %v2130_v6 = vmin.u32 %v1428_v0, %v3480_v28  ;;  %vm1499_vm8 = vcmp.lt.s32.totalorder %v3452_v32, 2  ;;  %v1508_v48 = vsel %vm1500_vm6, %v1491_v16, %v1507_v60  ;;  %v1510_v33 = vsel %vm1498_vm5, %v1488_v55, %v1491_v16 }
 0x1af   : > { %v1509_v23 = vsel %vm1499_vm8, %v1506_v30, %v1508_v48  ;;  %v1512_v8 = vsel %vm1500_vm6, %v1494_v22, %v1511_v47  ;;  %v1514_v43 = vshll.u32 %v1474_v27, 8  ;;  %v1574_v59 = vshrl.u32 %v1573_v12, 23 }
 0x1b0   : > { %v1430_v31 = vclz %v2130_v6  ;;  %v1502_v40 = vsel %vm1498_vm5, %v1482_v46, %v1485_v52  ;;  %v1504_v11 = vsel %vm1500_vm6, %v1488_v55, %v1503_v4  ;;  %v1570_v14 = vand.u32 2147483647, %v3437_v13 }
 0x1b1   : > { %v1513_v37 = vsel %vm1499_vm8, %v1510_v33, %v1512_v8  ;;  %v3510_v26 = vmul.u32.u64.low %v1514_v43, %v1509_v23  ;;  %v3511_v10 = vmul.u32.u64.high %v1514_v43, %v1509_v23, %v3510_v26  ;;  %v2137_v24 = vadd.s32 4294967169, %v1574_v59 }
 0x1b2   : > { %v2131_v39 = vadd.s32 4294967294, %v1430_v31  ;;  %v1448_v56 = vsub.s32 4, %v3462_v25  ;;  %v3515_v42 = vmul.u32.u64.low %v1514_v43, %v1513_v37  ;;  %v3516_v36 = vmul.u32.u64.high %v1514_v43, %v1513_v37, %v3515_v42 }
 0x1b3   : > { %v3520_v20 = vmul.f32 %v3107_v45, %v2532_v18  ;;  %v3524_v52 = vadd.f32 %v3420_v51, %v2647_v50  ;;  %vm3528_vm9 = vcmp.le.f32.partialorder %v1362_v44, 0.7853982  ;;  %v1580_v7 = vadd.s32 1, %v2137_v24 }
 0x1b4   : > { %vm1357_vm10 = vcmp.eq.s32.totalorder %v3482_v2, 2  ;;  %vm1364_vm11 = vcmp.lt.s32.totalorder %v3285_v49, 0  ;;  %vm2132_vm12 = vcmp.lt.s32.totalorder %v2131_v39, 0  ;;  %v1505_v18 = vsel %vm1499_vm8, %v1502_v40, %v1504_v11 }
 0x1b5   : > { %v1433_v45 = vsel %vm2132_vm12, 0, %v2131_v39  ;;  %v1524_v38 = vadd.s32 1, %v3511_v10  ;;  %v3539_v50 = vand.u32 8388607, %v1570_v14  ;;  %vm1581_vm13 = vcmp.gt.s32.totalorder %v1580_v7, 0 }
 0x1b6   : > { %v1418_v44 = vadd.s32 %v3410_v53, %v3416_v9  ;;  %v1434_v51 = vsub.s32 32, %v1433_v45  ;;  %v1438_v29 = vsub.s32 4294967266, %v1433_v45  ;;  %v1449_v41 = vsel %vm1364_vm11, %v1448_v56, %v3462_v25 }
 0x1b7   : > { %v2310_v16 = vpop.eup %2309  ;;  %v1435_v32 = vshll.u32 %v3480_v28, %v1433_v45  ;;  %v1521_v5 = vmul.u32 %v1514_v43, %v1505_v18  ;;  %vm1523_vm14 = vc.u32 %v3516_v36, %v3510_v26  ;;  %v1582_v35 = vsel %vm1581_vm13, %v1580_v7, 0 }
 0x1b8   : > { %v2312_v22 = vpop.eup %2311  ;;  %v1358_v21 = vxor.u32 2147483648, %v2310_v16  ;;  %v1436_v17 = vshrl.u32 %v1418_v44, %v1434_v51  ;;  %v1439_v27 = vadd.s32 127, %v1438_v29  ;;  %v1525_v53 = vsel %vm1523_vm14, %v1524_v38, %v3511_v10 }
 0x1b9   : > { %v1355_v9 = vxor.u32 2147483648, %v2312_v22  ;;  %v1526_v12 = vadd.s32 %v1525_v53, %v1521_v5  ;;  %v1584_v0 = vand.u32 31, %v1582_v35  ;;  %v1677_v30 = vand.u32 2139095040, %v3524_v52 }
 0x1ba   : > { %vm1354_vm15 = vcmp.eq.s32.totalorder %v3482_v2, 0  ;;  %v1359_v25 = vsel %vm1357_vm10, %v1358_v21, %v2312_v22  ;;  %v1437_v28 = vor.u32 %v1436_v17, %v1435_v32  ;;  %v1440_v46 = vshll.u32 %v1439_v27, 23 }
 0x1bb   : > { %vm1353_vm0 = vcmp.lt.s32.totalorder %v3482_v2, 2  ;;  %v1356_v4 = vsel %vm1354_vm15, %v2310_v16, %v1355_v9  ;;  %v1527_v60 = vadd.s32 536870912, %v1526_v12  ;;  %v1585_v47 = vsub.s32 32, %v1584_v0 }
 0x1bc   : > { %vm1350_vm1 = vweird.f32 %v3170_v54  ;;  %v1360_v6 = vsel %vm1353_vm0, %v1356_v4, %v1359_v25  ;;  %v1441_v48 = vor.u32 4788187, %v1440_v46  ;;  %v1451_v33 = vsel %vm3528_vm9, 0, %v1449_v41 }
 0x1bd   : > { %v1361_v23 = vsel %vm1350_vm1, nan, %v1360_v6  ;;  %v3558_v8 = vshrl.u32 %v1527_v60, 30  ;;  %v1578_v43 = vor.u32 8388608, %v3539_v50  ;;  %v1678_v59 = vshrl.u32 %v1677_v30, 23 }
 0x1be   : > { %v1442_v31 = vand.u32 2147483647, %v1441_v48  ;;  %v1444_v40 = vcvt.s32.f32 %v1437_v28  ;;  %v1588_v2 = vshrl.u32 %v2401_v61, %v1585_v47  ;;  %v1591_v11 = vshrl.u32 %v2402_v63, %v1585_v47  ;;  %1987 = vst [vmem:[%s2853_s7 + $0x48] sm:$0xff] %v1361_v23 }
 0x1bf   : > { %v1529_v54 = vshll.u32 %v3558_v8, 30  ;;  %v1583_v37 = vshrl.u32 %v1582_v35, 5  ;;  %v1587_v10 = vshll.u32 %v2400_v57, %v1584_v0  ;;  %v1594_v24 = vshrl.u32 %v2403_v1, %v1585_v47 }
 0x1c0   : > { %v1445_v39 = vmul.f32 %v1444_v40, %v1442_v31  ;;  %v1590_v56 = vshll.u32 %v2401_v61, %v1584_v0  ;;  %v1596_v42 = vshll.u32 %v2403_v1, %v1584_v0  ;;  %v1597_v7 = vshrl.u32 %v2404_v3, %v1585_v47 }
 0x1c1   : > { %v3572_v18 = vadd.f32 %v3433_v19, %v2900_v58  ;;  %v3574_v45 = vsub.s32 %v1526_v12, %v1529_v54  ;;  %v1593_v38 = vshll.u32 %v2402_v63, %v1584_v0  ;;  %v1600_v50 = vshrl.u32 %v2405_v15, %v1585_v47 }
 0x1c2   : > { %v1446_v44 = vxor.u32 2147483648, %v1445_v39  ;;  %v1589_v51 = vor.u32 %v1588_v2, %v1587_v10  ;;  %v1592_v29 = vor.u32 %v1591_v11, %v1590_v56  ;;  %v1598_v41 = vor.u32 %v1597_v7, %v1596_v42 }
 0x1c3   : > { %v1455_v16 = vadd.s32 3, %v1451_v33  ;;  %vm1468_vm2 = vcmp.lt.s32.totalorder %v3331_v62, 0  ;;  %v1532_v32 = vsub.s32 0, %v3574_v45  ;;  %v1595_v5 = vor.u32 %v1594_v24, %v1593_v38 }
 0x1c4   : > { %v1599_v35 = vshll.u32 %v2404_v3, %v1584_v0  ;;  %v1447_v19 = vsel %vm1364_vm11, %v1446_v44, %v1445_v39  ;;  %vm1602_vm3 = vcmp.lt.s32.totalorder %v1583_v37, 1  ;;  %v1618_v22 = vshll.u32 %v1578_v43, 8 }
 0x1c5   : > { %v2141_v21 = vadd.s32 4294967169, %v1678_v59  ;;  %v1450_v17 = vsel %vm3528_vm9, %v3285_v49, %v1447_v19  ;;  %v2134_v27 = vmin.u32 %v1532_v32, %v3574_v45  ;;  %vm1605_vm4 = vcmp.lt.s32.totalorder %v1583_v37, 4 }
 0x1c6   : > { %v1601_v53 = vor.u32 %v1600_v50, %v1599_v35  ;;  %2313 = vcosq.f32 %v1450_v17  ;;  %v1586_v9 = vshrl.u32 %v2400_v57, %v1585_v47  ;;  %v1610_v12 = vsel %vm1602_vm3, %v1589_v51, %v1592_v29 }
 0x1c7   : > { %v1611_v0 = vsel %vm1605_vm4, %v1598_v41, 920167782  ;;  %2315 = vsinq.f32 %v1450_v17  ;;  %vm3592_vm5 = vcmp.le.f32.partialorder %v1466_v34, 0.7853982  ;;  %v1534_v55 = vclz %v2134_v27 }
 0x1c8   : > { %vm1604_vm6 = vcmp.lt.s32.totalorder %v1583_v37, 3  ;;  %v1607_v25 = vsel %vm1605_vm4, %v1595_v5, 2102212464  ;;  %v1552_v28 = vsub.s32 4, %v3558_v8  ;;  %vm1603_vm7 = vcmp.lt.s32.totalorder %v1583_v37, 2 }
 0x1c9   : > { %v1612_v46 = vsel %vm1604_vm6, %v1595_v5, %v1611_v0  ;;  %v1614_v4 = vsel %vm1602_vm3, %v1592_v29, %v1595_v5  ;;  %v2135_v60 = vadd.s32 4294967294, %v1534_v55  ;;  %v1606_v47 = vsel %vm1602_vm3, %v1586_v9, %v1589_v51 }
 0x1ca   : > { %v1613_v6 = vsel %vm1603_vm7, %v1610_v12, %v1612_v46  ;;  %v1615_v34 = vsel %vm1605_vm4, %v1601_v53, 1326507024  ;;  %v1608_v48 = vsel %vm1604_vm6, %v1592_v29, %v1607_v25  ;;  %v1522_v59 = vadd.s32 %v3510_v26, %v3516_v36 }
 0x1cb   : > { %v1616_v33 = vsel %vm1604_vm6, %v1598_v41, %v1615_v34  ;;  %v3602_v23 = vmul.u32.u64.low %v1618_v22, %v1613_v6  ;;  %v3603_v43 = vmul.u32.u64.high %v1618_v22, %v1613_v6, %v3602_v23  ;;  %vm2136_vm8 = vcmp.lt.s32.totalorder %v2135_v60, 0 }
 0x1cc   : > { %v1617_v31 = vsel %vm1603_vm7, %v1614_v4, %v1616_v33  ;;  %v1684_v40 = vadd.s32 1, %v2141_v21  ;;  %v1537_v2 = vsel %vm2136_vm8, 0, %v2135_v60  ;;  %v1553_v11 = vsel %vm1468_vm2, %v1552_v28, %v3558_v8 }
 0x1cd   : > { %v3612_v54 = vmul.u32.u64.low %v1618_v22, %v1617_v31  ;;  %v3613_v10 = vmul.u32.u64.high %v1618_v22, %v1617_v31, %v3612_v54  ;;  %v1538_v24 = vsub.s32 32, %v1537_v2  ;;  %v1542_v39 = vsub.s32 4294967266, %v1537_v2 }
 0x1ce   : > { %v1609_v56 = vsel %vm1603_vm7, %v1606_v47, %v1608_v48  ;;  %vm1685_vm9 = vcmp.gt.s32.totalorder %v1684_v40, 0  ;;  %v1456_v42 = vand.u32 3, %v1455_v16  ;;  %v1628_v26 = vadd.s32 1, %v3603_v43 }
 0x1cf   : > { %v1674_v36 = vand.u32 2147483647, %v3524_v52  ;;  %v1686_v7 = vsel %vm1685_vm9, %v1684_v40, 0  ;;  %v1539_v38 = vshll.u32 %v3574_v45, %v1537_v2  ;;  %v1540_v50 = vshrl.u32 %v1522_v59, %v1538_v24 }
 0x1d0   : > { %v1543_v44 = vadd.s32 127, %v1542_v39  ;;  %v1688_v51 = vand.u32 31, %v1686_v7  ;;  %vm1454_vm10 = vweird.f32 %v3285_v49  ;;  %v1555_v8 = vsel %vm3592_vm5, 0, %v1553_v11 }
 0x1d1   : > { %v1625_v29 = vmul.u32 %v1618_v22, %v1609_v56  ;;  %vm1627_vm11 = vc.u32 %v3613_v10, %v3602_v23  ;;  %v1541_v37 = vor.u32 %v1540_v50, %v1539_v38  ;;  %vm1457_vm12 = vcmp.lt.s32.totalorder %v1456_v42, 2 }
 0x1d2   : > { %v1544_v41 = vshll.u32 %v1543_v44, 23  ;;  %v1629_v16 = vsel %vm1627_vm11, %v1628_v26, %v3603_v43  ;;  %v1689_v32 = vsub.s32 32, %v1688_v51  ;;  %vm1458_vm13 = vcmp.eq.s32.totalorder %v1456_v42, 0 }
 0x1d3   : > { %vm1461_vm14 = vcmp.eq.s32.totalorder %v1456_v42, 2  ;;  %v1630_v45 = vadd.s32 %v1629_v16, %v1625_v29  ;;  %v2314_v5 = vpop.eup %2313  ;;  %v3625_v19 = vadd.s32 3, %v1555_v8  ;;  %v1681_v21 = vand.u32 8388607, %v1674_v36 }
 0x1d4   : > { %v1545_v35 = vor.u32 4788187, %v1544_v41  ;;  %v3629_v22 = vshrl.u32 %v1686_v7, 5  ;;  %v2316_v17 = vpop.eup %2315  ;;  %v1462_v27 = vxor.u32 2147483648, %v2314_v5  ;;  %v1691_v9 = vshll.u32 %v2400_v57, %v1688_v51 }
 0x1d5   : > { %v1631_v53 = vadd.s32 536870912, %v1630_v45  ;;  %v1694_v12 = vshll.u32 %v2401_v61, %v1688_v51  ;;  %v1459_v0 = vxor.u32 2147483648, %v2316_v17  ;;  %v1548_v25 = vcvt.s32.f32 %v1541_v37 }
 0x1d6   : > { %v1546_v55 = vand.u32 2147483647, %v1545_v35  ;;  %v1692_v28 = vshrl.u32 %v2401_v61, %v1689_v32  ;;  %v1463_v46 = vsel %vm1461_vm14, %v1462_v27, %v2316_v17  ;;  %v1695_v60 = vshrl.u32 %v2402_v63, %v1689_v32 }
 0x1d7   : > { %v3635_v4 = vshrl.u32 %v1631_v53, 30  ;;  %v1698_v47 = vshrl.u32 %v2403_v1, %v1689_v32  ;;  %v1460_v6 = vsel %vm1458_vm13, %v2314_v5, %v1459_v0  ;;  %v1700_v48 = vshll.u32 %v2403_v1, %v1688_v51 }
 0x1d8   : > { %v1549_v34 = vmul.f32 %v1548_v25, %v1546_v55  ;;  %v1701_v33 = vshrl.u32 %v2404_v3, %v1689_v32  ;;  %v1464_v43 = vsel %vm1457_vm12, %v1460_v6, %v1463_v46  ;;  %v1697_v31 = vshll.u32 %v2402_v63, %v1688_v51 }
 0x1d9   : > { %v1633_v59 = vshll.u32 %v3635_v4, 30  ;;  %v1704_v40 = vshrl.u32 %v2405_v15, %v1689_v32  ;;  %v1465_v2 = vsel %vm1454_vm10, nan, %v1464_v43  ;;  %v1703_v24 = vshll.u32 %v2404_v3, %v1688_v51 }
 0x1da   : > { %v1550_v11 = vxor.u32 2147483648, %v1549_v34  ;;  %v1702_v54 = vor.u32 %v1701_v33, %v1700_v48  ;;  %v1693_v56 = vor.u32 %v1692_v28, %v1691_v9  ;;  %v1696_v26 = vor.u32 %v1695_v60, %v1694_v12  ;;  %1988 = vst [vmem:[%s2853_s7 + $0x50] sm:$0xff] %v1465_v2 }
 0x1db   : > { %v3649_v39 = vsub.s32 %v1630_v45, %v1633_v59  ;;  %v1699_v7 = vor.u32 %v1698_v47, %v1697_v31  ;;  %v1682_v38 = vor.u32 8388608, %v1681_v21  ;;  %v1705_v50 = vor.u32 %v1704_v40, %v1703_v24 }
 0x1dc   : > { %v1551_v42 = vsel %vm1468_vm2, %v1550_v11, %v1549_v34  ;;  %v1781_v44 = vand.u32 2139095040, %v3572_v18  ;;  %v1690_v51 = vshrl.u32 %v2400_v57, %v1689_v32  ;;  %vm1709_vm15 = vcmp.lt.s32.totalorder %v3629_v22, 4 }
 0x1dd   : > { %v1554_v49 = vsel %vm3592_vm5, %v3331_v62, %v1551_v42  ;;  %v1636_v8 = vsub.s32 0, %v3649_v39  ;;  %vm1706_vm0 = vcmp.lt.s32.totalorder %v3629_v22, 1  ;;  %vm1708_vm1 = vcmp.lt.s32.totalorder %v3629_v22, 3 }
 0x1de   : > { %2317 = vcosq.f32 %v1554_v49  ;;  %v1715_v29 = vsel %vm1709_vm15, %v1702_v54, 920167782  ;;  %v1711_v41 = vsel %vm1709_vm15, %v1699_v7, 2102212464  ;;  %v1714_v16 = vsel %vm1706_vm0, %v1693_v56, %v1696_v26 }
 0x1df   : > { %2319 = vsinq.f32 %v1554_v49  ;;  %v2138_v37 = vmin.u32 %v1636_v8, %v3649_v39  ;;  %v1716_v30 = vsel %vm1708_vm1, %v1699_v7, %v1715_v29  ;;  %v1718_v45 = vsel %vm1706_vm0, %v1696_v26, %v1699_v7 }
 0x1e0   : > { %v1719_v5 = vsel %vm1709_vm15, %v1705_v50, 1326507024  ;;  %v1722_v35 = vshll.u32 %v1682_v38, 8  ;;  %v1656_v21 = vsub.s32 4, %v3635_v4  ;;  %vm1707_vm2 = vcmp.lt.s32.totalorder %v3629_v22, 2 }
 0x1e1   : > { %v1638_v32 = vclz %v2138_v37  ;;  %v1710_v17 = vsel %vm1706_vm0, %v1690_v51, %v1693_v56  ;;  %v1712_v27 = vsel %vm1708_vm1, %v1696_v26, %v1711_v41  ;;  %v1717_v53 = vsel %vm1707_vm2, %v1714_v16, %v1716_v30 }
 0x1e2   : > { %v1720_v9 = vsel %vm1708_vm1, %v1702_v54, %v1719_v5  ;;  %v1782_v12 = vshrl.u32 %v1781_v44, 23  ;;  %v3672_v25 = vmul.u32.u64.low %v1722_v35, %v1717_v53  ;;  %v3673_v28 = vmul.u32.u64.high %v1722_v35, %v1717_v53, %v3672_v25 }
 0x1e3   : > { %v2139_v0 = vadd.s32 4294967294, %v1638_v32  ;;  %v1721_v55 = vsel %vm1707_vm2, %v1718_v45, %v1720_v9  ;;  %v3678_v46 = vadd.f32 %v3520_v20, %v2900_v58  ;;  %v1560_v34 = vand.u32 3, %v3625_v19 }
 0x1e4   : > { %v3680_v60 = vmul.u32.u64.low %v1722_v35, %v1721_v55  ;;  %v3681_v47 = vmul.u32.u64.high %v1722_v35, %v1721_v55, %v3680_v60  ;;  %v2145_v6 = vadd.s32 4294967169, %v1782_v12  ;;  %vm1572_vm3 = vcmp.lt.s32.totalorder %v3437_v13, 0 }
 0x1e5   : > { %vm2140_vm4 = vcmp.lt.s32.totalorder %v2139_v0, 0  ;;  %v1713_v22 = vsel %vm1707_vm2, %v1710_v17, %v1712_v27  ;;  %v1626_v48 = vadd.s32 %v3602_v23, %v3613_v10  ;;  %v1778_v43 = vand.u32 2147483647, %v3572_v18 }
 0x1e6   : > { %v1641_v33 = vsel %vm2140_vm4, 0, %v2139_v0  ;;  %v1788_v59 = vadd.s32 1, %v2145_v6  ;;  %v1657_v20 = vsel %vm1572_vm3, %v1656_v21, %v3635_v4  ;;  %v1732_v40 = vadd.s32 1, %v3673_v28 }
 0x1e7   : > { %v1642_v31 = vsub.s32 32, %v1641_v33  ;;  %v1646_v58 = vsub.s32 4294967266, %v1641_v33  ;;  %v1643_v19 = vshll.u32 %v3649_v39, %v1641_v33  ;;  %v1729_v2 = vmul.u32 %v1722_v35, %v1713_v22 }
 0x1e8   : > { %vm1731_vm5 = vc.u32 %v3681_v47, %v3672_v25  ;;  %vm1789_vm6 = vcmp.gt.s32.totalorder %v1788_v59, 0  ;;  %vm3698_vm7 = vcmp.le.f32.partialorder %v1570_v14, 0.7853982  ;;  %v1785_v39 = vand.u32 8388607, %v1778_v43 }
 0x1e9   : > { %v1644_v23 = vshrl.u32 %v1626_v48, %v1642_v31  ;;  %v1647_v10 = vadd.s32 127, %v1646_v58  ;;  %v1733_v11 = vsel %vm1731_vm5, %v1732_v40, %v3673_v28  ;;  %v1790_v54 = vsel %vm1789_vm6, %v1788_v59, 0 }
 0x1ea   : > { %v1734_v4 = vadd.s32 %v1733_v11, %v1729_v2  ;;  %v1792_v56 = vand.u32 31, %v1790_v54  ;;  %vm1558_vm8 = vweird.f32 %v3331_v62  ;;  %v1659_v38 = vsel %vm3698_vm7, 0, %v1657_v20 }
 0x1eb   : > { %v2318_v26 = vpop.eup %2317  ;;  %v1645_v7 = vor.u32 %v1644_v23, %v1643_v19  ;;  %v1648_v42 = vshll.u32 %v1647_v10, 23  ;;  %vm1561_vm9 = vcmp.lt.s32.totalorder %v1560_v34, 2  ;;  %vm1562_vm10 = vcmp.eq.s32.totalorder %v1560_v34, 0 }
 0x1ec   : > { %v2320_v50 = vpop.eup %2319  ;;  %v1566_v44 = vxor.u32 2147483648, %v2318_v26  ;;  %v1735_v14 = vadd.s32 536870912, %v1734_v4  ;;  %v1793_v49 = vsub.s32 32, %v1792_v56  ;;  %vm1565_vm11 = vcmp.eq.s32.totalorder %v1560_v34, 2 }
 0x1ed   : > { %v1563_v8 = vxor.u32 2147483648, %v2320_v50  ;;  %v1649_v51 = vor.u32 4788187, %v1648_v42  ;;  %v3707_v37 = vadd.s32 3, %v1659_v38  ;;  %v1786_v16 = vor.u32 8388608, %v1785_v39 }
 0x1ee   : > { %v1567_v29 = vsel %vm1565_vm11, %v1566_v44, %v2320_v50  ;;  %v3709_v41 = vshrl.u32 %v1735_v14, 30  ;;  %v1652_v5 = vcvt.s32.f32 %v1645_v7  ;;  %v1796_v35 = vshrl.u32 %v2401_v61, %v1793_v49 }
 0x1ef   : > { %v1564_v30 = vsel %vm1562_vm10, %v2318_v26, %v1563_v8  ;;  %v1650_v45 = vand.u32 2147483647, %v1649_v51  ;;  %v1799_v17 = vshrl.u32 %v2402_v63, %v1793_v49  ;;  %v1885_v27 = vand.u32 2139095040, %v3678_v46 }
 0x1f0   : > { %v1568_v32 = vsel %vm1561_vm9, %v1564_v30, %v1567_v29  ;;  %v1737_v21 = vshll.u32 %v3709_v41, 30  ;;  %v1795_v12 = vshll.u32 %v2400_v57, %v1792_v56  ;;  %v1802_v0 = vshrl.u32 %v2403_v1, %v1793_v49 }
 0x1f1   : > { %v1569_v53 = vsel %vm1558_vm8, nan, %v1568_v32  ;;  %v1653_v9 = vmul.f32 %v1652_v5, %v1650_v45  ;;  %v1791_v28 = vshrl.u32 %v1790_v54, 5  ;;  %v1798_v60 = vshll.u32 %v2401_v61, %v1792_v56 }
 0x1f2   : > { %v3720_v55 = vsub.s32 %v1734_v4, %v1737_v21  ;;  %v1805_v6 = vshrl.u32 %v2404_v3, %v1793_v49  ;;  %1989 = vst [vmem:[%s2853_s7 + $0x58] sm:$0xff] %v1569_v53  ;;  %v1797_v22 = vor.u32 %v1796_v35, %v1795_v12  ;;  %v1801_v48 = vshll.u32 %v2402_v63, %v1792_v56 }
 0x1f3   : > { %v1654_v34 = vxor.u32 2147483648, %v1653_v9  ;;  %v1804_v62 = vshll.u32 %v2403_v1, %v1792_v56  ;;  %v1800_v59 = vor.u32 %v1799_v17, %v1798_v60  ;;  %v1807_v31 = vshll.u32 %v2404_v3, %v1792_v56 }
 0x1f4   : > { %v1740_v33 = vsub.s32 0, %v3720_v55  ;;  %v1808_v58 = vshrl.u32 %v2405_v15, %v1793_v49  ;;  %v1803_v40 = vor.u32 %v1802_v0, %v1801_v48  ;;  %v1826_v2 = vshll.u32 %v1786_v16, 8 }
 0x1f5   : > { %v1655_v20 = vsel %vm1572_vm3, %v1654_v34, %v1653_v9  ;;  %v1806_v19 = vor.u32 %v1805_v6, %v1804_v62  ;;  %v1886_v54 = vshrl.u32 %v1885_v27, 23  ;;  %v1794_v4 = vshrl.u32 %v2400_v57, %v1793_v49 }
 0x1f6   : > { %v1658_v23 = vsel %vm3698_vm7, %v3437_v13, %v1655_v20  ;;  %v2142_v10 = vmin.u32 %v1740_v33, %v3720_v55  ;;  %v1809_v11 = vor.u32 %v1808_v58, %v1807_v31  ;;  %vm1810_vm12 = vcmp.lt.s32.totalorder %v1791_v28, 1 }
 0x1f7   : > { %2321 = vcosq.f32 %v1658_v23  ;;  %vm1811_vm13 = vcmp.lt.s32.totalorder %v1791_v28, 2  ;;  %vm1813_vm14 = vcmp.lt.s32.totalorder %v1791_v28, 4  ;;  %v1818_v56 = vsel %vm1810_vm12, %v1797_v22, %v1800_v59 }
 0x1f8   : > { %2323 = vsinq.f32 %v1658_v23  ;;  %v1742_v39 = vclz %v2142_v10  ;;  %vm1812_vm15 = vcmp.lt.s32.totalorder %v1791_v28, 3  ;;  %v1815_v26 = vsel %vm1813_vm14, %v1803_v40, 2102212464 }
 0x1f9   : > { %v1819_v7 = vsel %vm1813_vm14, %v1806_v19, 920167782  ;;  %v1822_v42 = vsel %vm1810_vm12, %v1800_v59, %v1803_v40  ;;  %v1814_v24 = vsel %vm1810_vm12, %v1794_v4, %v1797_v22  ;;  %v1823_v44 = vsel %vm1813_vm14, %v1809_v11, 1326507024 }
 0x1fa   : > { %v2143_v38 = vadd.s32 4294967294, %v1742_v39  ;;  %v1820_v50 = vsel %vm1812_vm15, %v1803_v40, %v1819_v7  ;;  %v1816_v14 = vsel %vm1812_vm15, %v1800_v59, %v1815_v26  ;;  %v1824_v51 = vsel %vm1812_vm15, %v1806_v19, %v1823_v44 }
 0x1fb   : > { %v1821_v8 = vsel %vm1811_vm13, %v1818_v56, %v1820_v50  ;;  %v2149_v29 = vadd.s32 4294967169, %v1886_v54  ;;  %v1825_v49 = vsel %vm1811_vm13, %v1822_v42, %v1824_v51  ;;  %v1730_v32 = vadd.s32 %v3672_v25, %v3681_v47 }
 0x1fc   : > { %vm2144_vm0 = vcmp.lt.s32.totalorder %v2143_v38, 0  ;;  %v3739_v16 = vmul.u32.u64.low %v1826_v2, %v1821_v8  ;;  %v3740_v30 = vmul.u32.u64.high %v1826_v2, %v1821_v8, %v3739_v16  ;;  %v1817_v27 = vsel %vm1811_vm13, %v1814_v24, %v1816_v14 }
 0x1fd   : > { %v1745_v45 = vsel %vm2144_vm0, 0, %v2143_v38  ;;  %v3743_v5 = vmul.u32.u64.low %v1826_v2, %v1825_v49  ;;  %v3744_v35 = vmul.u32.u64.high %v1826_v2, %v1825_v49, %v3743_v5  ;;  %v1664_v53 = vand.u32 3, %v3707_v37 }
 0x1fe   : > { %v1746_v21 = vsub.s32 32, %v1745_v45  ;;  %v1750_v17 = vsub.s32 4294967266, %v1745_v45  ;;  %v1882_v9 = vand.u32 2147483647, %v3678_v46  ;;  %v1892_v12 = vadd.s32 1, %v2149_v29 }
 0x1ff   : > { %v1747_v0 = vshll.u32 %v3720_v55, %v1745_v45  ;;  %v1836_v34 = vadd.s32 1, %v3740_v30  ;;  %v1833_v22 = vmul.u32 %v1826_v2, %v1817_v27  ;;  %vm1835_vm1 = vc.u32 %v3744_v35, %v3739_v16 }
 0x200   : > { %v1748_v60 = vshrl.u32 %v1730_v32, %v1746_v21  ;;  %v1751_v6 = vadd.s32 127, %v1750_v17  ;;  %vm1893_vm2 = vcmp.gt.s32.totalorder %v1892_v12, 0  ;;  %vm1662_vm3 = vweird.f32 %v3437_v13 }
 0x201   : > { %v1837_v28 = vsel %vm1835_vm1, %v1836_v34, %v3740_v30  ;;  %v1894_v48 = vsel %vm1893_vm2, %v1892_v12, 0  ;;  %v1760_v37 = vsub.s32 4, %v3709_v41  ;;  %vm1665_vm4 = vcmp.lt.s32.totalorder %v1664_v53, 2 }
 0x202   : > { %v1749_v25 = vor.u32 %v1748_v60, %v1747_v0  ;;  %v1752_v47 = vshll.u32 %v1751_v6, 23  ;;  %v1838_v62 = vadd.s32 %v1837_v28, %v1833_v22  ;;  %v1896_v55 = vand.u32 31, %v1894_v48 }
 0x203   : > { %vm3760_vm5 = vcmp.le.f32.partialorder %v1674_v36, 0.7853982  ;;  %vm1676_vm6 = vcmp.lt.s32.totalorder %v3524_v52, 0  ;;  %v1889_v58 = vand.u32 8388607, %v1882_v9  ;;  %vm1666_vm7 = vcmp.eq.s32.totalorder %v1664_v53, 0 }
 0x204   : > { %v2322_v33 = vpop.eup %2321  ;;  %v1753_v31 = vor.u32 4788187, %v1752_v47  ;;  %v1839_v19 = vadd.s32 536870912, %v1838_v62  ;;  %v1897_v2 = vsub.s32 32, %v1896_v55  ;;  %vm1669_vm8 = vcmp.eq.s32.totalorder %v1664_v53, 2 }
 0x205   : > { %v2324_v20 = vpop.eup %2323  ;;  %v1670_v40 = vxor.u32 2147483648, %v2322_v33  ;;  %v1756_v11 = vcvt.s32.f32 %v1749_v25  ;;  %v1761_v36 = vsel %vm1676_vm6, %v1760_v37, %v3709_v41  ;;  %v1890_v7 = vor.u32 8388608, %v1889_v58 }
 0x206   : > { %v1667_v23 = vxor.u32 2147483648, %v2324_v20  ;;  %v1754_v10 = vand.u32 2147483647, %v1753_v31  ;;  %v3770_v4 = vshrl.u32 %v1839_v19, 30  ;;  %v1900_v39 = vshrl.u32 %v2401_v61, %v1897_v2 }
 0x207   : > { %v1671_v54 = vsel %vm1669_vm8, %v1670_v40, %v2324_v20  ;;  %v1899_v42 = vshll.u32 %v2400_v57, %v1896_v55  ;;  %v1903_v50 = vshrl.u32 %v2402_v63, %v1897_v2  ;;  %v1906_v44 = vshrl.u32 %v2403_v1, %v1897_v2 }
 0x208   : > { %v1668_v56 = vsel %vm1666_vm7, %v2322_v33, %v1667_v23  ;;  %v1757_v26 = vmul.f32 %v1756_v11, %v1754_v10  ;;  %v1841_v24 = vshll.u32 %v3770_v4, 30  ;;  %v1895_v8 = vshrl.u32 %v1894_v48, 5 }
 0x209   : > { %v1672_v38 = vsel %vm1665_vm4, %v1668_v56, %v1671_v54  ;;  %v1902_v51 = vshll.u32 %v2401_v61, %v1896_v55  ;;  %v1901_v49 = vor.u32 %v1900_v39, %v1899_v42  ;;  %v1905_v30 = vshll.u32 %v2402_v63, %v1896_v55 }
 0x20a   : > { %v1673_v41 = vsel %vm1662_vm3, nan, %v1672_v38  ;;  %v1758_v14 = vxor.u32 2147483648, %v1757_v26  ;;  %v1842_v29 = vsub.s32 %v1838_v62, %v1841_v24  ;;  %v1909_v45 = vshrl.u32 %v2404_v3, %v1897_v2 }
 0x20b   : > { %1990 = vst [vmem:[%s2853_s7 + $0x60] sm:$0xff] %v1673_v41  ;;  %v1908_v32 = vshll.u32 %v2403_v1, %v1896_v55  ;;  %v1911_v21 = vshll.u32 %v2404_v3, %v1896_v55  ;;  %v1912_v13 = vshrl.u32 %v2405_v15, %v1897_v2  ;;  %v1904_v27 = vor.u32 %v1903_v50, %v1902_v51 }
 0x20c   : > { %v1759_v5 = vsel %vm1676_vm6, %v1758_v14, %v1757_v26  ;;  %v1844_v17 = vsub.s32 0, %v1842_v29  ;;  %v1907_v53 = vor.u32 %v1906_v44, %v1905_v30  ;;  %v1763_v60 = vsel %vm3760_vm5, 0, %v1761_v36 }
 0x20d   : > { %v1762_v61 = vsel %vm3760_vm5, %v3524_v52, %v1759_v5  ;;  %v1910_v63 = vor.u32 %v1909_v45, %v1908_v32  ;;  %v1913_v12 = vor.u32 %v1912_v13, %v1911_v21  ;;  %vm1914_vm9 = vcmp.lt.s32.totalorder %v1895_v8, 1 }
 0x20e   : > { %2325 = vcosq.f32 %v1762_v61  ;;  %v2146_v0 = vmin.u32 %v1844_v17, %v1842_v29  ;;  %vm1916_vm10 = vcmp.lt.s32.totalorder %v1895_v8, 3  ;;  %v1930_v1 = vshll.u32 %v1890_v7, 8 }
 0x20f   : > { %2327 = vsinq.f32 %v1762_v61  ;;  %vm1917_vm11 = vcmp.lt.s32.totalorder %v1895_v8, 4  ;;  %v1922_v15 = vsel %vm1914_vm9, %v1901_v49, %v1904_v27  ;;  %v1926_v6 = vsel %vm1914_vm9, %v1904_v27, %v1907_v53 }
 0x210   : > { %v1846_v3 = vclz %v2146_v0  ;;  %v1898_v34 = vshrl.u32 %v2400_v57, %v1897_v2  ;;  %v1919_v22 = vsel %vm1917_vm11, %v1907_v53, 2102212464  ;;  %v1923_v25 = vsel %vm1917_vm11, %v1910_v63, 920167782 }
 0x211   : > { %v1927_v47 = vsel %vm1917_vm11, %v1913_v12, 1326507024  ;;  %vm1915_vm12 = vcmp.lt.s32.totalorder %v1895_v8, 2  ;;  %v1924_v48 = vsel %vm1916_vm10, %v1907_v53, %v1923_v25  ;;  %v1767_v62 = vadd.s32 3, %v1763_v60 }
 0x212   : > { %v2147_v28 = vadd.s32 4294967294, %v1846_v3  ;;  %v1928_v37 = vsel %vm1916_vm10, %v1910_v63, %v1927_v47  ;;  %v1918_v55 = vsel %vm1914_vm9, %v1898_v34, %v1901_v49  ;;  %v1925_v33 = vsel %vm1915_vm12, %v1922_v15, %v1924_v48 }
 0x213   : > { %v1929_v59 = vsel %vm1915_vm12, %v1926_v6, %v1928_v37  ;;  %v1920_v31 = vsel %vm1916_vm10, %v1904_v27, %v1919_v22  ;;  %v3806_v40 = vmul.u32.u64.low %v1930_v1, %v1925_v33  ;;  %v3807_v19 = vmul.u32.u64.high %v1930_v1, %v1925_v33, %v3806_v40 }
 0x214   : > { %vm2148_vm13 = vcmp.lt.s32.totalorder %v2147_v28, 0  ;;  %v3803_v57 = vmul.u32.u64.low %v1930_v1, %v1929_v59  ;;  %v3804_v58 = vmul.u32.u64.high %v1930_v1, %v1929_v59, %v3803_v57  ;;  %v1834_v2 = vadd.s32 %v3739_v16, %v3744_v35 }
 0x215   : > { %v1849_v20 = vsel %vm2148_vm13, 0, %v2147_v28  ;;  %v1768_v11 = vand.u32 3, %v1767_v62  ;;  %v1921_v54 = vsel %vm1915_vm12, %v1918_v55, %v1920_v31  ;;  %v1940_v26 = vadd.s32 1, %v3807_v19 }
 0x216   : > { %v1850_v23 = vsub.s32 32, %v1849_v20  ;;  %v1854_v10 = vsub.s32 4294967266, %v1849_v20  ;;  %v1851_v36 = vshll.u32 %v1842_v29, %v1849_v20  ;;  %vm1939_vm14 = vc.u32 %v3804_v58, %v3806_v40 }
 0x217   : > { %v1937_v24 = vmul.u32 %v1930_v1, %v1921_v54  ;;  %v1941_v16 = vsel %vm1939_vm14, %v1940_v26, %v3807_v19  ;;  %vm1773_vm15 = vcmp.eq.s32.totalorder %v1768_v11, 2  ;;  %vm1769_vm0 = vcmp.lt.s32.totalorder %v1768_v11, 2 }
 0x218   : > { %v1852_v39 = vshrl.u32 %v1834_v2, %v1850_v23  ;;  %v1855_v56 = vadd.s32 127, %v1854_v10  ;;  %vm1770_vm1 = vcmp.eq.s32.totalorder %v1768_v11, 0  ;;  %vm1766_vm2 = vweird.f32 %v3524_v52 }
 0x219   : > { %v1942_v14 = vadd.s32 %v1941_v16, %v1937_v24  ;;  %vm1780_vm3 = vcmp.lt.s32.totalorder %v3572_v18, 0  ;;  %v1864_v17 = vsub.s32 4, %v3770_v4  ;;  %vm1779_vm4 = vcmp.le.f32.partialorder %v1778_v43, 0.7853982 }
 0x21a   : > { %v1853_v42 = vor.u32 %v1852_v39, %v1851_v36  ;;  %v1856_v38 = vshll.u32 %v1855_v56, 23  ;;  %v1938_v34 = vadd.s32 %v3806_v40, %v3804_v58  ;;  %vm1870_vm9 = vweird.f32 %v3572_v18 }
 0x21b   : > { %v2326_v7 = vpop.eup %2325  ;;  %v1943_v30 = vadd.s32 536870912, %v1942_v14  ;;  %v1865_v12 = vsel %vm1780_vm3, %v1864_v17, %v3770_v4  ;;  %vm1884_vm10 = vcmp.lt.s32.totalorder %v3678_v46, 0  ;;  %vm1883_vm11 = vcmp.le.f32.partialorder %v1882_v9, 0.7853982 }
 0x21c   : > { %v2328_v50 = vpop.eup %2327  ;;  %v1774_v44 = vxor.u32 2147483648, %v2326_v7  ;;  %v1857_v41 = vor.u32 4788187, %v1856_v38  ;;  %v1860_v49 = vcvt.s32.f32 %v1853_v42  ;;  %v1867_v60 = vsel %vm1779_vm4, 0, %v1865_v12 }
 0x21d   : > { %v1771_v35 = vxor.u32 2147483648, %v2328_v50  ;;  %v1944_v21 = vshrl.u32 %v1943_v30, 30  ;;  %v1871_v15 = vadd.s32 3, %v1867_v60 }
 0x21e   : > { %v1775_v8 = vsel %vm1773_vm15, %v1774_v44, %v2328_v50  ;;  %v1858_v29 = vand.u32 2147483647, %v1857_v41  ;;  %vm1974_vm15 = vweird.f32 %v3678_v46 }
 0x21f   : > { %v1772_v51 = vsel %vm1770_vm1, %v2326_v7, %v1771_v35  ;;  %v1945_v61 = vshll.u32 %v1944_v21, 30  ;;  %v1872_v25 = vand.u32 3, %v1871_v15  ;;  %v1968_v11 = vsub.s32 4, %v1944_v21 }
 0x220   : > { %v1776_v45 = vsel %vm1769_vm0, %v1772_v51, %v1775_v8  ;;  %v1861_v32 = vmul.f32 %v1860_v49, %v1858_v29 }
 0x221   : > { %v1777_v5 = vsel %vm1766_vm2, nan, %v1776_v45  ;;  %v1946_v53 = vsub.s32 %v1942_v14, %v1945_v61  ;;  %vm1877_vm6 = vcmp.eq.s32.totalorder %v1872_v25, 2  ;;  %vm1874_vm7 = vcmp.eq.s32.totalorder %v1872_v25, 0 }
 0x222   : > { %1991 = vst [vmem:[%s2853_s7 + $0x68] sm:$0xff] %v1777_v5  ;;  %v1862_v13 = vxor.u32 2147483648, %v1861_v32  ;;  %vm1873_vm8 = vcmp.lt.s32.totalorder %v1872_v25, 2 }
 0x223   : > { %v1948_v52 = vsub.s32 0, %v1946_v53 }
 0x224   : > { %v1863_v27 = vsel %vm1780_vm3, %v1862_v13, %v1861_v32 }
 0x225   : > { %v1866_v63 = vsel %vm1779_vm4, %v3572_v18, %v1863_v27  ;;  %v2150_v0 = vmin.u32 %v1948_v52, %v1946_v53  ;;  %v1969_v18 = vsel %vm1884_vm10, %v1968_v11, %v1944_v21 }
 0x226   : > { %2329 = vcosq.f32 %v1866_v63  ;;  %v1971_v39 = vsel %vm1883_vm11, 0, %v1969_v18 }
 0x227   : > { %2331 = vsinq.f32 %v1866_v63  ;;  %v1950_v1 = vclz %v2150_v0  ;;  %v1975_v56 = vadd.s32 3, %v1971_v39 }
 0x229   : > { %v2151_v3 = vadd.s32 4294967294, %v1950_v1  ;;  %v1976_v26 = vand.u32 3, %v1975_v56 }
 0x22b   : > { %vm2152_vm5 = vcmp.lt.s32.totalorder %v2151_v3, 0  ;;  %vm1981_vm12 = vcmp.eq.s32.totalorder %v1976_v26, 2  ;;  %vm1978_vm13 = vcmp.eq.s32.totalorder %v1976_v26, 0  ;;  %vm1977_vm14 = vcmp.lt.s32.totalorder %v1976_v26, 2 }
 0x22c   : > { %v1953_v6 = vsel %vm2152_vm5, 0, %v2151_v3 }
 0x22d   : > { %v1954_v22 = vsub.s32 32, %v1953_v6  ;;  %v1958_v43 = vsub.s32 4294967266, %v1953_v6  ;;  %v1955_v47 = vshll.u32 %v1946_v53, %v1953_v6 }
 0x22f   : > { %v1956_v28 = vshrl.u32 %v1938_v34, %v1954_v22  ;;  %v1959_v48 = vadd.s32 127, %v1958_v43 }
 0x231   : > { %v1957_v4 = vor.u32 %v1956_v28, %v1955_v47  ;;  %v1960_v33 = vshll.u32 %v1959_v48, 23 }
 0x233   : > { %v2330_v37 = vpop.eup %2329  ;;  %v1961_v57 = vor.u32 4788187, %v1960_v33  ;;  %v1964_v19 = vcvt.s32.f32 %v1957_v4 }
 0x234   : > { %v2332_v62 = vpop.eup %2331  ;;  %v1878_v55 = vxor.u32 2147483648, %v2330_v37 }
 0x235   : > { %v1875_v59 = vxor.u32 2147483648, %v2332_v62  ;;  %v1962_v40 = vand.u32 2147483647, %v1961_v57 }
 0x236   : > { %v1879_v31 = vsel %vm1877_vm6, %v1878_v55, %v2332_v62 }
 0x237   : > { %v1876_v20 = vsel %vm1874_vm7, %v2330_v37, %v1875_v59  ;;  %v1965_v23 = vmul.f32 %v1964_v19, %v1962_v40 }
 0x238   : > { %v1880_v58 = vsel %vm1873_vm8, %v1876_v20, %v1879_v31 }
 0x239   : > { %v1881_v2 = vsel %vm1870_vm9, nan, %v1880_v58  ;;  %v1966_v10 = vxor.u32 2147483648, %v1965_v23 }
 0x23a   : > { %1992 = vst [vmem:[%s2853_s7 + $0x70] sm:$0xff] %v1881_v2 }
 0x23b   : > { %v1967_v54 = vsel %vm1884_vm10, %v1966_v10, %v1965_v23 }
 0x23c   : > { %v1970_v36 = vsel %vm1883_vm11, %v3678_v46, %v1967_v54 }
 0x23d   : > { %2333 = vcosq.f32 %v1970_v36 }
 0x23e   : > { %2335 = vsinq.f32 %v1970_v36 }
 0x24a   : > { %v2334_v7 = vpop.eup %2333 }
 0x24b   : > { %v2336_v42 = vpop.eup %2335  ;;  %v1982_v38 = vxor.u32 2147483648, %v2334_v7 }
 0x24c   : > { %v1979_v24 = vxor.u32 2147483648, %v2336_v42 }
 0x24d   : > { %v1983_v9 = vsel %vm1981_vm12, %v1982_v38, %v2336_v42 }
 0x24e   : > { %v1980_v50 = vsel %vm1978_vm13, %v2334_v7, %v1979_v24 }
 0x24f   : > { %v1984_v44 = vsel %vm1977_vm14, %v1980_v50, %v1983_v9 }
 0x250   : > { %v1985_v16 = vsel %vm1974_vm15, nan, %v1984_v44 }
 0x251   : > { %1993 = vst [vmem:[%s2853_s7 + $0x78] sm:$0xff] %v1985_v16 }
 0x252   : > { %2350 = shalt.err (!%p2347_p3)
}
 0x253   : > { %s2351_s29 = scalar_lea.hbm %s3835_s20, 2048  ;;  %s2355_s6 = scalar_lea.hbm %s3887_s4, 4096 }
 0x254   : > { %p2352_p4 = scmp.ne.s32.totalorder %s3835_s20, %s2351_s29  ;;  %p2356_p9 = scmp.lt.s32.totalorder %s3835_s20, %s3887_s4 }
 0x255   : > { %p2357_p10 = scmp.lt.s32.totalorder %s2355_s6, %s2351_s29 }
 0x256   : > { %p2353_p7 = pnand %p2352_p4, %p2472_p5 }
 0x257   : > { %p2358_p11 = por %p2357_p10, %p2356_p9 }
 0x258   : > { %p2354_p8 = pneg %p2353_p7 }
 0x25a   : > { %p2359_p12 = pnand %p2358_p11, %p2354_p8 }
 0x25c   : > { %2362 = shalt.err (!%p2359_p12)
}
 0x25d   : > { %s2407_s9 = smov 256   ;;  %s2408_s10 = smov 16  }
 0x25e   : > { %2223 = dma.vmem_to_hbm [thread:$0]  (%p2472_p5), %s3837_s12, 2048, %s3835_s20, %s3843_s19, %s2407_s9, %s2407_s9, %s2408_s10  }
 0x25f PF: > { %p2229_p13 = scmp.ge.s32.totalorder %s2397_s18, 2  ;;  %s2023_s11 = sand.u32 1, %s2385_s15  }
 0x260   : > { %s2024_s13 = scalar_lea.sflag [#allocation3], %s2023_s11 }
 0x261   : > { %p2226_p0 = pnand %p2229_p13, %p2476_p6 }
 0x263   : > { %p2227_p1 = pneg %p2226_p0 }
 0x265   : > { %2380 = dma.done.wait (%p2227_p1), %s2024_s13, 2048  }
 0x266   : > { %2382 = vsyncadd (%p2227_p1), %s2024_s13, 4294965248  ;;  %p14_p2 = scmp.ge.s32.totalorder %s2459_s21, 4   ;;  %s3918_s15 = smov %s2389_s16 }
 0x267   : > { %s3919_s16 = smov %s2393_s17  ;;  %s3920_s17 = smov %s2470_s24 }
 0x268   : > { %s3921_s18 = smov %s2459_s21  ;;  %16 = sbr.rel (!%p14_p2) target bundleno = 3 (0x3), region = 74 }
 0x26d   :  { %2029 = vsyncpa [#allocation3], 1 }
 0x26e   :  { %2031 = vsyncpa [#allocation3 + $0x1], 1 }

</bundles_post_ra>
